<compile_context>
chip_gen: v5e
topology: v5e:2x2
jax: 0.10.0
libtpu: 0.0.40
codegen_flags: <defaults>
</compile_context>

<pallas_src>
import functools

import jax
import jax.numpy as jnp
from jax.experimental import pallas as pl
from jax.experimental.pallas import tpu as pltpu

KERNEL_SIZES = (3, 4, 5)


def _round_up(x, m):
    return ((x + m - 1) // m) * m


def _textcnn_kernel(emb_ref, w_ref, bmask_ref, wfc_ref, bfc_ref, out_ref,
                    xcol_ref, *, k_max):
    """One batch block per grid step (fused conv -> relu -> maxpool -> fc).

    emb_ref   : (Bt, Lp, E)   bf16 embedded tokens (time zero-padded to Lp)
    w_ref     : (KEp, Np)     bf16 im2col conv weight slab (zero-padded)
    bmask_ref : (T, Np)       f32  conv bias + additive validity mask (-1e30)
    wfc_ref   : (Np, Op)      bf16 fc weight (zero rows on filter padding)
    bfc_ref   : (1, Op)       f32  fc bias
    out_ref   : (Bt, Op)      f32  logits
    xcol_ref  : (Bt*T, KEp)   bf16 VMEM scratch: im2col LHS
    """
    bt, _, e = emb_ref.shape
    ke_pad, n_pad = w_ref.shape
    t_len = bmask_ref.shape[0]            # multiple of 16 (bf16 sublane packing)

    # --- im2col: build one (Bt*T, KEp) LHS so the conv is a single matmul. ----
    for dk in range(k_max):                                      # static unroll
        piece = emb_ref[:, dk:dk + t_len, :]                     # (Bt, T, E)
        xcol_ref[:, dk * e:(dk + 1) * e] = piece.reshape(bt * t_len, e)
    if ke_pad > k_max * e:                                       # zero lane pad
        # unconditional each step (scratch is core-local and uninitialized)
        xcol_ref[:, k_max * e:] = jnp.zeros(
            (bt * t_len, ke_pad - k_max * e), xcol_ref.dtype)

    # --- conv (one MXU pass over K=KEp) + bias/mask + ReLU + time max. --------
    acc = jnp.dot(xcol_ref[...], w_ref[...],
                  preferred_element_type=jnp.float32)            # (Bt*T, Np) f32
    acc = acc.reshape(bt, t_len, n_pad) + bmask_ref[...]         # bias & -1e30
    acc = jnp.maximum(acc, 0.0)                                  # ReLU; mask -> 0
    pooled = jnp.max(acc, axis=1)                                # (Bt, Np)

    # --- FC: pooled is already [p3 | p4 | p5 | 0...]; no concatenate. ---------
    out_ref[...] = jnp.dot(pooled.astype(wfc_ref.dtype), wfc_ref[...],
                           preferred_element_type=jnp.float32) + bfc_ref[...]


def textcnn_forward(x_tokens, emb_table, w3, b3, w4, b4, w5, b5, wfc, bfc,
                    *, block_b=None):
    B, L = x_tokens.shape
    E = emb_table.shape[1]
    F = w3.shape[-1]
    O = wfc.shape[-1]
    k_min, k_max = min(KERNEL_SIZES), max(KERNEL_SIZES)
    assert L >= k_max, "sequence must be at least max kernel size (cf. predict())"

    n_f = len(KERNEL_SIZES) * F
    T = _round_up(L - k_min + 1, 16)    # conv time positions; 16 = bf16 sublanes
    L_pad = T + k_max - 1               # every shifted window stays in-bounds
    KE = k_max * E
    KE_pad = _round_up(KE, 128)         # lane-dense im2col contraction dim
    N_pad = _round_up(n_f, 128)         # lane-dense fused filter dim
    O_pad = _round_up(O, 128)           # lane-dense output dim

    # ---- VMEM footprint model (accounts for lane/sublane padding in VMEM). ----
    E_lane = _round_up(E, 128)
    Lp_sub = _round_up(L_pad, 16)

    def _foot(bt):
        return (2 * bt * Lp_sub * E_lane * 2      # bf16 emb block, double buffered
                + bt * T * KE_pad * 2             # bf16 im2col scratch
                + bt * T * N_pad * 4              # f32 conv/relu intermediate
                + 2 * (KE_pad * N_pad * 2         # bf16 conv weight slab (2 bufs)
                       + T * N_pad * 4            # f32 bias+mask         (2 bufs)
                       + N_pad * O_pad * 2        # bf16 fc weight        (2 bufs)
                       + O_pad * 4)               # f32 fc bias           (2 bufs)
                + 2 * bt * O_pad * 4)             # f32 output block, double buffered

    # ---- choose the batch tile -------------------------------------------------
    if block_b is None:
        block_b = 8
        # keep >= 2 grid steps (v7x: 2 TensorCores) while growing under the cap
        target = max(8, _round_up(B, 8) // 2)
        while block_b * 2 <= min(target, 256) and _foot(block_b * 2) < (16 << 20):
            block_b *= 2
    n_blocks = -(-B // block_b)
    if n_blocks > 1 and n_blocks % 2 == 1:
        n_blocks += 1                   # even grid: both v7x TCs stay busy
    B_pad = n_blocks * block_b

    # ---- glue JAX: embedding gather + padding (bf16 activations) ---------------
    # TODO(synk): fuse this gather into the kernel via scalar-prefetched ids.
    ids = jnp.zeros((B_pad, L_pad), x_tokens.dtype).at[:B, :L].set(x_tokens)
    emb = emb_table.astype(jnp.bfloat16)[ids]                    # (B_pad, L_pad, E)

    # Fused im2col conv weight slab: branch bi occupies columns [bi*F,(bi+1)*F);
    # rows are (tap dk, embed e) flattened dk-major; taps >= k are zero so they
    # contribute exactly 0 for that branch.
    w_col = jnp.zeros((KE_pad, N_pad), jnp.float32)
    for bi, (k, w) in enumerate(zip(KERNEL_SIZES, (w3, w4, w5))):
        w_col = w_col.at[:k * E, bi * F:(bi + 1) * F].set(jnp.reshape(w, (k * E, F)))
    w_col = w_col.astype(jnp.bfloat16)

    # Bias + additive validity mask: bias where (t, col) is a valid conv output
    # for that branch, -1e30 otherwise, so relu(conv + bmask) == 0 there and the
    # time max (over post-ReLU values >= 0) is exact.  Padded filter columns and
    # padded time rows stay at -1e30.
    bmask = jnp.full((T, N_pad), -1e30, jnp.float32)
    t_idx = jnp.arange(T)[:, None]
    for bi, (k, b) in enumerate(zip(KERNEL_SIZES, (b3, b4, b5))):
        valid = (t_idx <= (L - k)).astype(jnp.float32)           # (T, 1)
        col = valid * jnp.reshape(b, (1, F)) + (1.0 - valid) * (-1e30)
        bmask = bmask.at[:, bi * F:(bi + 1) * F].set(col)

    wfc_p = (jnp.zeros((N_pad, O_pad), jnp.float32)
             .at[:n_f, :O].set(wfc).astype(jnp.bfloat16))
    bfc_p = jnp.zeros((1, O_pad), jnp.float32).at[:, :O].set(jnp.reshape(bfc, (1, O)))

    grid = (B_pad // block_b,)
    kernel = functools.partial(_textcnn_kernel, k_max=k_max)
    out = pl.pallas_call(
        kernel,
        out_shape=jax.ShapeDtypeStruct((B_pad, O_pad), jnp.float32),
        grid=grid,
        in_specs=[
            pl.BlockSpec((block_b, L_pad, E), lambda b: (b, 0, 0)),  # emb block
            pl.BlockSpec((KE_pad, N_pad), lambda b: (0, 0)),         # conv weights
            pl.BlockSpec((T, N_pad), lambda b: (0, 0)),              # bias + mask
            pl.BlockSpec((N_pad, O_pad), lambda b: (0, 0)),          # fc weight
            pl.BlockSpec((1, O_pad), lambda b: (0, 0)),              # fc bias
        ],
        out_specs=pl.BlockSpec((block_b, O_pad), lambda b: (b, 0)),
        scratch_shapes=[pltpu.VMEM((block_b * T, KE_pad), jnp.bfloat16)],
        compiler_params=pltpu.CompilerParams(
            dimension_semantics=("parallel",),
            vmem_limit_bytes=32 * 1024 * 1024),
    )(emb, w_col, bmask, wfc_p, bfc_p)

    return out[:B, :O]                                           # (B, O)


def reference_forward(x_tokens, emb_table, w3, b3, w4, b4, w5, b5, wfc, bfc,
                      compute_dtype=jnp.float32):
    """Pure-JAX reference matching the PyTorch forward (eval mode)."""
    emb = emb_table[x_tokens].astype(compute_dtype)              # (B, L, E)
    L = emb.shape[1]
    pooled = []
    for w, b in ((w3, b3), (w4, b4), (w5, b5)):
        k = w.shape[0]
        t = L - k + 1
        conv = sum(jnp.einsum('ble,ef->blf', emb[:, dk:dk + t, :],
                              w[dk].astype(compute_dtype),
                              preferred_element_type=jnp.float32)
                   for dk in range(k)) + jnp.reshape(b, (1, 1, -1))
        pooled.append(jnp.max(jax.nn.relu(conv), axis=1))        # (B, F)
    cat = jnp.concatenate(pooled, axis=-1)
    return (jnp.dot(cat.astype(compute_dtype), wfc.astype(compute_dtype),
                    preferred_element_type=jnp.float32)
            + jnp.reshape(bfc, (1, -1)))


if __name__ == "__main__":
    # Small deterministic config consistent with CNNModel.__init__ (scaled down):
    B, L = 16, 8
    VOCAB, E, F, O = 50, 32, 16, 4

    key = jax.random.PRNGKey(0)
    ks = jax.random.split(key, 10)

    emb_table = 0.1 * jax.random.normal(ks[0], (VOCAB, E), jnp.float32)
    emb_table = emb_table.at[0].set(0.0)                 # padding_idx=0 -> zero row

    def conv_init(kw, kb, k):
        fan_in = k * E
        bound = 1.0 / (fan_in ** 0.5)
        w = jax.random.uniform(kw, (k, E, F), jnp.float32, -bound, bound)
        b = jax.random.uniform(kb, (1, F), jnp.float32, -bound, bound)
        return w, b

    w3, b3 = conv_init(ks[1], ks[2], KERNEL_SIZES[0])
    w4, b4 = conv_init(ks[3], ks[4], KERNEL_SIZES[1])
    w5, b5 = conv_init(ks[5], ks[6], KERNEL_SIZES[2])

    fc_bound = 1.0 / ((len(KERNEL_SIZES) * F) ** 0.5)
    wfc = jax.random.uniform(ks[7], (len(KERNEL_SIZES) * F, O), jnp.float32,
                             -fc_bound, fc_bound)
    bfc = jax.random.uniform(ks[8], (1, O), jnp.float32, -fc_bound, fc_bound)

    x = jax.random.randint(ks[9], (B, L), 0, VOCAB, dtype=jnp.int32)

    out = textcnn_forward(x, emb_table, w3, b3, w4, b4, w5, b5, wfc, bfc)
    out = jax.block_until_ready(out)
    assert out.shape == (B, O)

    # Tight check against a reference using the same bf16 operand precision.
    ref_bf16 = reference_forward(x, emb_table, w3, b3, w4, b4, w5, b5, wfc, bfc,
                                 compute_dtype=jnp.bfloat16)
    assert jnp.allclose(out, ref_bf16, atol=2e-3, rtol=2e-3), (out, ref_bf16)

    # Loose check against the exact f32 PyTorch-semantics reference.
    ref_f32 = reference_forward(x, emb_table, w3, b3, w4, b4, w5, b5, wfc, bfc,
                                compute_dtype=jnp.float32)
    assert jnp.allclose(out, ref_f32, atol=3e-2, rtol=3e-2), (out, ref_f32)

    print("KERNEL_OK")
</pallas_src>

<mosaic_0001>
module attributes {stable_mosaic.version = 11 : i64} {
  func.func @_textcnn_kernel(%arg0: i32, %arg1: memref<8x20x32xbf16, #tpu.memory_space<vmem>>, %arg2: memref<256x128xbf16, #tpu.memory_space<vmem>>, %arg3: memref<16x128xf32, #tpu.memory_space<vmem>>, %arg4: memref<128x128xbf16, #tpu.memory_space<vmem>>, %arg5: memref<1x128xf32, #tpu.memory_space<vmem>>, %arg6: memref<8x128xf32, #tpu.memory_space<vmem>>, %arg7: memref<128x256xbf16, #tpu.memory_space<vmem>>) attributes {dimension_semantics = [#tpu.dimension_semantics<parallel>], iteration_bounds = array<i64: 2>, scalar_prefetch = 0 : i64, scratch_operands = 1 : i64, tpu.core_type = #tpu.core_type<tc>, window_params = [{transform_indices = @transform_0, window_bounds = array<i64: 8, 20, 32>}, {pipeline_mode = #tpu.pipeline_mode<synchronous>, transform_indices = @transform_1, window_bounds = array<i64: 256, 128>}, {pipeline_mode = #tpu.pipeline_mode<synchronous>, transform_indices = @transform_2, window_bounds = array<i64: 16, 128>}, {pipeline_mode = #tpu.pipeline_mode<synchronous>, transform_indices = @transform_3, window_bounds = array<i64: 128, 128>}, {pipeline_mode = #tpu.pipeline_mode<synchronous>, transform_indices = @transform_4, window_bounds = array<i64: 1, 128>}, {transform_indices = @transform_5, window_bounds = array<i64: 8, 128>}]} {
    %c0 = arith.constant 0 : index
    %c0_0 = arith.constant 0 : index
    %c0_1 = arith.constant 0 : index
    %0 = vector.load %arg1[%c0, %c0_0, %c0_1] : memref<8x20x32xbf16, #tpu.memory_space<vmem>>, vector<8x16x32xbf16>
    %1 = vector.shape_cast %0 : vector<8x16x32xbf16> to vector<128x32xbf16>
    %c0_2 = arith.constant 0 : index
    %c0_3 = arith.constant 0 : index
    %2 = vector.load %arg7[%c0_2, %c0_3] : memref<128x256xbf16, #tpu.memory_space<vmem>>, vector<128x32xbf16>
    tpu.vector_store %arg7[%c0_2, %c0_3], %1 {strides = array<i32>} : memref<128x256xbf16, #tpu.memory_space<vmem>>, vector<128x32xbf16>,
    %c0_4 = arith.constant 0 : index
    %c1 = arith.constant 1 : index
    %c0_5 = arith.constant 0 : index
    %3 = vector.load %arg1[%c0_4, %c1, %c0_5] : memref<8x20x32xbf16, #tpu.memory_space<vmem>>, vector<8x16x32xbf16>
    %4 = vector.shape_cast %3 : vector<8x16x32xbf16> to vector<128x32xbf16>
    %c0_6 = arith.constant 0 : index
    %c32 = arith.constant 32 : index
    %5 = vector.load %arg7[%c0_6, %c32] : memref<128x256xbf16, #tpu.memory_space<vmem>>, vector<128x32xbf16>
    tpu.vector_store %arg7[%c0_6, %c32], %4 {strides = array<i32>} : memref<128x256xbf16, #tpu.memory_space<vmem>>, vector<128x32xbf16>,
    %c0_7 = arith.constant 0 : index
    %c2 = arith.constant 2 : index
    %c0_8 = arith.constant 0 : index
    %6 = vector.load %arg1[%c0_7, %c2, %c0_8] : memref<8x20x32xbf16, #tpu.memory_space<vmem>>, vector<8x16x32xbf16>
    %7 = vector.shape_cast %6 : vector<8x16x32xbf16> to vector<128x32xbf16>
    %c0_9 = arith.constant 0 : index
    %c64 = arith.constant 64 : index
    %8 = vector.load %arg7[%c0_9, %c64] : memref<128x256xbf16, #tpu.memory_space<vmem>>, vector<128x32xbf16>
    tpu.vector_store %arg7[%c0_9, %c64], %7 {strides = array<i32>} : memref<128x256xbf16, #tpu.memory_space<vmem>>, vector<128x32xbf16>,
    %c0_10 = arith.constant 0 : index
    %c3 = arith.constant 3 : index
    %c0_11 = arith.constant 0 : index
    %9 = vector.load %arg1[%c0_10, %c3, %c0_11] : memref<8x20x32xbf16, #tpu.memory_space<vmem>>, vector<8x16x32xbf16>
    %10 = vector.shape_cast %9 : vector<8x16x32xbf16> to vector<128x32xbf16>
    %c0_12 = arith.constant 0 : index
    %c96 = arith.constant 96 : index
    %11 = vector.load %arg7[%c0_12, %c96] : memref<128x256xbf16, #tpu.memory_space<vmem>>, vector<128x32xbf16>
    tpu.vector_store %arg7[%c0_12, %c96], %10 {strides = array<i32>} : memref<128x256xbf16, #tpu.memory_space<vmem>>, vector<128x32xbf16>,
    %c0_13 = arith.constant 0 : index
    %c4 = arith.constant 4 : index
    %c0_14 = arith.constant 0 : index
    %12 = vector.load %arg1[%c0_13, %c4, %c0_14] : memref<8x20x32xbf16, #tpu.memory_space<vmem>>, vector<8x16x32xbf16>
    %13 = vector.shape_cast %12 : vector<8x16x32xbf16> to vector<128x32xbf16>
    %c0_15 = arith.constant 0 : index
    %c128 = arith.constant 128 : index
    %14 = vector.load %arg7[%c0_15, %c128] : memref<128x256xbf16, #tpu.memory_space<vmem>>, vector<128x32xbf16>
    tpu.vector_store %arg7[%c0_15, %c128], %13 {strides = array<i32>} : memref<128x256xbf16, #tpu.memory_space<vmem>>, vector<128x32xbf16>,
    %cst = arith.constant 0.000000e+00 : bf16
    %15 = vector.broadcast %cst : bf16 to vector<128x96xbf16>
    %c0_16 = arith.constant 0 : index
    %c160 = arith.constant 160 : index
    %16 = vector.load %arg7[%c0_16, %c160] : memref<128x256xbf16, #tpu.memory_space<vmem>>, vector<128x96xbf16>
    tpu.vector_store %arg7[%c0_16, %c160], %15 {strides = array<i32>} : memref<128x256xbf16, #tpu.memory_space<vmem>>, vector<128x96xbf16>,
    %c0_17 = arith.constant 0 : index
    %c0_18 = arith.constant 0 : index
    %17 = vector.load %arg7[%c0_17, %c0_18] : memref<128x256xbf16, #tpu.memory_space<vmem>>, vector<128x256xbf16>
    %c0_19 = arith.constant 0 : index
    %c0_20 = arith.constant 0 : index
    %18 = vector.load %arg2[%c0_19, %c0_20] : memref<256x128xbf16, #tpu.memory_space<vmem>>, vector<256x128xbf16>
    %cst_21 = arith.constant dense<0.000000e+00> : vector<128x128xf32>
    %19 = tpu.matmul %17, %18, %cst_21 {dimension_numbers = #tpu.dot_dimension_numbers<[1], [0], [0], [1], [0, 0, 1, 1], [], []>} : vector<128x256xbf16>, vector<256x128xbf16>, vector<128x128xf32> -> vector<128x128xf32>
    %20 = vector.shape_cast %19 : vector<128x128xf32> to vector<8x16x128xf32>
    %c0_22 = arith.constant 0 : index
    %c0_23 = arith.constant 0 : index
    %21 = vector.load %arg3[%c0_22, %c0_23] : memref<16x128xf32, #tpu.memory_space<vmem>>, vector<16x128xf32>
    %22 = vector.shape_cast %21 : vector<16x128xf32> to vector<1x16x128xf32>
    %23 = vector.broadcast %22 : vector<1x16x128xf32> to vector<8x16x128xf32>
    %24 = arith.addf %20, %23 : vector<8x16x128xf32>
    %cst_24 = arith.constant 0.000000e+00 : f32
    %25 = vector.broadcast %cst_24 : f32 to vector<8x16x128xf32>
    %26 = arith.maximumf %24, %25 : vector<8x16x128xf32>
    %cst_25 = arith.constant dense<0xFF800000> : vector<8x128xf32>
    %27 = vector.multi_reduction <maximumf>, %26, %cst_25 [1] : vector<8x16x128xf32> to vector<8x128xf32>
    %28 = arith.truncf %27 : vector<8x128xf32> to vector<8x128xbf16>
    %c0_26 = arith.constant 0 : index
    %c0_27 = arith.constant 0 : index
    %29 = vector.load %arg4[%c0_26, %c0_27] : memref<128x128xbf16, #tpu.memory_space<vmem>>, vector<128x128xbf16>
    %cst_28 = arith.constant dense<0.000000e+00> : vector<8x128xf32>
    %30 = tpu.matmul %28, %29, %cst_28 {dimension_numbers = #tpu.dot_dimension_numbers<[1], [0], [0], [1], [0, 0, 1, 1], [], []>} : vector<8x128xbf16>, vector<128x128xbf16>, vector<8x128xf32> -> vector<8x128xf32>
    %c0_29 = arith.constant 0 : index
    %c0_30 = arith.constant 0 : index
    %31 = vector.load %arg5[%c0_29, %c0_30] : memref<1x128xf32, #tpu.memory_space<vmem>>, vector<1x128xf32>
    %32 = vector.broadcast %31 : vector<1x128xf32> to vector<8x128xf32>
    %33 = arith.addf %30, %32 : vector<8x128xf32>
    %c0_31 = arith.constant 0 : index
    %c0_32 = arith.constant 0 : index
    %34 = vector.load %arg6[%c0_31, %c0_32] : memref<8x128xf32, #tpu.memory_space<vmem>>, vector<8x128xf32>
    tpu.vector_store %arg6[%c0_31, %c0_32], %33 {strides = array<i32>} : memref<8x128xf32, #tpu.memory_space<vmem>>, vector<8x128xf32>,
    return
  }
  func.func @transform_0(%arg0: i32) -> (i32, i32, i32) {
    %c0_i32 = arith.constant 0 : i32
    %c0_i32_0 = arith.constant 0 : i32
    %c0_i32_1 = arith.constant 0 : i32
    return %arg0, %c0_i32, %c0_i32_0 : i32, i32, i32
  }
  func.func @transform_1(%arg0: i32) -> (i32, i32) {
    %c0_i32 = arith.constant 0 : i32
    %c0_i32_0 = arith.constant 0 : i32
    %c0_i32_1 = arith.constant 0 : i32
    return %c0_i32, %c0_i32_0 : i32, i32
  }
  func.func @transform_2(%arg0: i32) -> (i32, i32) {
    %c0_i32 = arith.constant 0 : i32
    %c0_i32_0 = arith.constant 0 : i32
    %c0_i32_1 = arith.constant 0 : i32
    return %c0_i32, %c0_i32_0 : i32, i32
  }
  func.func @transform_3(%arg0: i32) -> (i32, i32) {
    %c0_i32 = arith.constant 0 : i32
    %c0_i32_0 = arith.constant 0 : i32
    %c0_i32_1 = arith.constant 0 : i32
    return %c0_i32, %c0_i32_0 : i32, i32
  }
  func.func @transform_4(%arg0: i32) -> (i32, i32) {
    %c0_i32 = arith.constant 0 : i32
    %c0_i32_0 = arith.constant 0 : i32
    %c0_i32_1 = arith.constant 0 : i32
    return %c0_i32, %c0_i32_0 : i32, i32
  }
  func.func @transform_5(%arg0: i32) -> (i32, i32) {
    %c0_i32 = arith.constant 0 : i32
    %c0_i32_0 = arith.constant 0 : i32
    return %arg0, %c0_i32 : i32, i32
  }
}

</mosaic_0001>

<bundles_post_ra>
// kernel: tpu_custom_call.1
= control target key start
LH: loop header
LB: loop body
LE: loop exit
PB: predicated region body
PF: predicated region fallthrough
CT: control target
= control target key end

     0   :  { %10 = vsyncpa [#allocation4], 0  ;;  %s2865_s0 = inlined_call_operand.vmem [shape: bf16[16,20,32], index: 0, kind: input, shape index: {}]   ;;  %s2866_s1 = inlined_call_operand.vmem [shape: bf16[256,128], index: 1, kind: input, shape index: {}]   ;;  %s2867_s2 = inlined_call_operand.vmem [shape: f32[16,128], index: 2, kind: input, shape index: {}]   ;;  %s2868_s3 = inlined_call_operand.vmem [shape: bf16[128,128], index: 3, kind: input, shape index: {}]   ;;  %s2869_s4 = inlined_call_operand.vmem [shape: f32[1,128], index: 4, kind: input, shape index: {}]   ;;  %s2870_s5 = inlined_call_operand.hbm [shape: f32[16,128], index: 5, kind: output, shape index: {}]  }
   0x1   :  { %12 = vsyncpa [#allocation4 + $0x1], 0  ;;  %s2185_s18 = smov 0   ;;  %s2187_s19 = smov 0  }
   0x2   :  { %s2189_s20 = smov 0   ;;  %s2191_s21 = smov 0  }
   0x3 LB: > { %s1798_s22 = sadd.s32 4294967295, %s2149_s21   ;;  %s1799_s23 = sadd.s32 4294967294, %s2149_s21   ;;  %s2149_s21 = sphi %s2191_s21, %s2884_s21   ;;  %s2145_s20 = sphi %s2189_s20, %s2883_s20   ;;  %s2141_s19 = sphi %s2187_s19, %s2882_s19   ;;  %s2137_s18 = sphi %s2185_s18, %s2881_s18  }
   0x4   : > { %s2208_s24 = sadd.s32 1, %s2149_s21   ;;  %s135_s25 = sadd.s32 1, %s2145_s20 }
   0x5   : > { %s132_s26 = ssub.s32 %s2149_s21, %s2208_s24  ;;  %p145_p0 = scmp.ne.s32.totalorder %s2145_s20, %s2141_s19 }
   0x6   : > { %p133_p1 = scmp.eq.s32.totalorder %s132_s26, 0  ;;  %p146_p2 = scmp.eq.s32.totalorder %s1798_s22, 1 }
   0x7   : > { %p151_p3 = scmp.ne.s32.totalorder %s2141_s19, %s2137_s18  ;;  %p152_p4 = scmp.eq.s32.totalorder %s1799_s23, 1 }
   0x8   : > { %s2218_s27 = scalar_select %p133_p1, %s2145_s20, %s135_s25  }
   0x9   : > { %p2220_p5 = por %p146_p2, %p145_p0  ;;  %p2224_p6 = por %p152_p4, %p151_p3 }
   0xa   : > { %p1802_p7 = scmp.ge.s32.totalorder %s2149_s21, 1  ;;  %p192_p8 = scmp.lt.s32.totalorder %s2149_s21, 3 }
   0xc   : > { %p193_p9 = pnand %p1802_p7, %p192_p8 }
   0xd   : > { %s2230_s30 = sshll.u32 (!%p193_p9), %s1798_s22, 3  ;;  %s2151_s11 = smov (!%p193_p9), 64  }
   0xe   : > { %196 = sbr.rel (%p193_p9) target bundleno = 584 (0x248), region = 40  ;;  %p222_p10 = scmp.lt.s32.totalorder (!%p193_p9), %s2230_s30, 15 }
   0xf   : > { %s2152_s12 = smov (!%p193_p9), 32   ;;  %s2153_s13 = smov (!%p193_p9), 96  }
  0x10   : > { %s1735_s14 = scalar_lea.hbm (!%p193_p9), %s2870_s5, %s2230_s30 }
  0x11   : > { %s1739_s23 = sshll.u32 (!%p193_p9), %s1735_s14, 4  ;;  %s1740_s23 = int_to_ptr.hbm [resolvable:$true] %s1739_s23 }
  0x12   : > { %s2101_s26 = sshra.s32 (!%p193_p9), %s1740_s23, 4  ;;  %s2102_s26 = int_to_ptr.hbm [resolvable:$true] %s2101_s26 }
  0x13   : > { %s223_s6 = scalar_select %p222_p10, %s2230_s30, 15  ;;  %vm594_vm0 = vcmask 1042432   ;;  %vm595_vm1 = vcmask 1046532   ;;  %vm286_vm2 = vsmask.f32 3328  ;;  %vm245_vm9 = vcmask 257024  }
  0x14   : > { %vm287_vm3 = vsmask.f32 7440  ;;  %vm2243_vm4 = vmor %vm594_vm0, %vm595_vm1  ;;  %vm742_vm6 = vsmask.f32 2304  ;;  %vm743_vm7 = vsmask.f32 6416  ;;  %p2108_p0 = scmp.lt.s32.totalorder %s2102_s26, %s2870_s5 }
  0x15   : > { %s2042_s7 = smul.u32 12, %s223_s6  ;;  %vm2257_vm5 = vmor %vm286_vm2, %vm287_vm3  ;;  %vm1082_vm10 = vcmask 1041408   ;;  %vm1083_vm11 = vcmask 1045508   ;;  %vm1173_vm13 = vcmask 1043712   ;;  %vm529_vm14 = vcmask 519424   ;;  %s218_s6 = sand.u32 1, %s2141_s19  }
  0x16   : > { %vm2292_vm8 = vmor %vm742_vm6, %vm743_vm7  ;;  %vm701_vm15 = vcmask 781824   ;;  %vm1017_vm0 = vcmask 1044224   ;;  %vm1646_vm1 = vcmask 1041409   ;;  %vm1648_vm2 = vcmask 1042434   ;;  %s1725_s25 = scalar_lea.sflag [#allocation4], %s218_s6 }
  0x17   : > { %s2237_s10 = scalar_lea.vmem %s2865_s0, %s2042_s7  ;;  %vm2523_vm12 = vmor %vm1082_vm10, %vm1083_vm11  ;;  %vm1650_vm3 = vcmask 1043459   ;;  %vm1656_vm6 = vcmask 1046534   ;;  %vm1658_vm7 = vcmask 1047559   ;;  %s1803_s7 = sshll.u32 %s218_s6, 3 }
  0x18   : > { %v262_v0 = vld [vmem:[%s2237_s10] sm:$0xf]  ;;  %v263_v1 = vld [vmem:[%s2237_s10 + $0x4] sm:$0xf]  ;;  %v548_v11 = vld [vmem:[%s2237_s10 + $0x8] sm:$0x1] }
  0x19   : > { %v546_v2 = vld [vmem:[%s2237_s10] sm:$0xe]  ;;  %v290_v3 = vshrl.u32 %v262_v0, 16  ;;  %v293_v4 = vshll.u32 %v262_v0, 16  ;;  %v299_v5 = vshll.u32 %v263_v1, 16  ;;  %v303_v6 = vshrl.u32 %v263_v1, 16 }
  0x1a   : > { %v547_v7 = vld [vmem:[%s2237_s10 + $0x4] sm:$0xf]  ;;  %v1806_v9 = vrot.slane %v546_v2, 9  ;;  %v265_v15 = vld [vmem:[%s2237_s10 + $0xc] sm:$0xf]  ;;  %v602_v22 = vrot.slane %v548_v11, 5 }
  0x1b   : > { %v599_v10 = vrot.slane %v547_v7, 5  ;;  %v292_v12 = vrot.slane %v290_v3, 4  ;;  %v295_v13 = vrot.slane %v293_v4, 5  ;;  %v305_v14 = vrot.slane %v303_v6, 4  ;;  %v264_v18 = vld [vmem:[%s2237_s10 + $0x8] sm:$0x1] }
  0x1c   : > { %v301_v16 = vrot.slane %v299_v5, 5  ;;  %v266_v20 = vld [vmem:[%s2237_s10 + $0x10] sm:$0xf]  ;;  %v314_v23 = vshrl.u32 %v265_v15, 16  ;;  %v317_v24 = vshll.u32 %v265_v15, 16  ;;  %v309_v33 = vshll.u32 %v264_v18, 16 }
  0x1d   : > { %v600_v17 = vsel %vm2243_vm4, %v1806_v9, %v599_v10  ;;  %v601_v19 = vrot.slane %v599_v10, 4  ;;  %v296_v21 = vor.u32 %v295_v13, %v292_v12  ;;  %v549_v25 = vld [vmem:[%s2237_s10 + $0xc] sm:$0xe]  ;;  %v323_v27 = vshll.u32 %v266_v20, 16  ;;  %v267_v29 = vld [vmem:[%s2237_s10 + $0x14] sm:$0x1] }
  0x1e   : > { %653 = vrot.lane.b32.xlu1 %v600_v17, %s2151_s11  ;;  %v327_v28 = vshrl.u32 %v266_v20, 16  ;;  %v2263_v30 = vld [vmem:[%s2237_s10 + $0x10] sm:$0xf]  ;;  %v306_v32 = vor.u32 %v305_v14, %v301_v16  ;;  %v316_v34 = vrot.slane %v314_v23, 4  ;;  %v319_v35 = vrot.slane %v317_v24, 5  ;;  %s220_s17 = scalar_lea.vmem [#allocation3], %s1803_s7 }
  0x1f   : > { %v297_v31 = vrot.slane %v296_v21, 4  ;;  %v2265_v36 = vrot.slane %v323_v27, 5  ;;  %v1807_v38 = vrot.slane %v549_v25, 9  ;;  %v333_v40 = vshll.u32 %v267_v29, 16  ;;  %v721_v42 = vld [vmem:[%s2237_s10 + $0xc] sm:$0xe] }
  0x20   : > { %v329_v37 = vrot.slane %v327_v28, 4  ;;  %v606_v41 = vrot.slane %v2263_v30, 5  ;;  %v603_v43 = vsel %vm2243_vm4, %v601_v19, %v602_v22  ;;  %v718_v45 = vld [vmem:[%s2237_s10] sm:$0xe]  ;;  %v307_v46 = vrot.slane %v306_v32, 4  ;;  %s1737_s22 = sshll.u32 %s220_s17, 4  ;;  %s1738_s22 = int_to_ptr.vmem [resolvable:$true] %s1737_s22 }
  0x21   : > { %v302_v39 = vsel %vm2257_vm5, %v297_v31, %v301_v16  ;;  %v311_v47 = vrot.slane %v309_v33, 5  ;;  %v722_v49 = vld [vmem:[%s2237_s10 + $0x10] sm:$0xf]  ;;  %v320_v50 = vor.u32 %v319_v35, %v316_v34  ;;  %v774_v51 = vshrl.u32 %v721_v42, 16  ;;  %v719_v53 = vld [vmem:[%s2237_s10 + $0x4] sm:$0xf] }
  0x22   : > { %481 = vrot.lane.b32.xlu0 %v302_v39, %s2152_s12  ;;  %v330_v44 = vor.u32 %v329_v37, %v2265_v36  ;;  %v607_v48 = vsel %vm2243_vm4, %v1807_v38, %v606_v41  ;;  %v777_v52 = vshll.u32 %v721_v42, 16  ;;  %v335_v55 = vrot.slane %v333_v40, 5  ;;  %v278_v61 = vld [vmem:[%s2237_s10 + $0x40] sm:$0xf]  ;;  %v720_v9 = vld [vmem:[%s2237_s10 + $0x8] sm:$0x3] }
  0x23   : > { %657 = vrot.lane.b32.xlu2 %v607_v48, %s2151_s11  ;;  %v746_v56 = vshrl.u32 %v718_v45, 16  ;;  %v776_v57 = vrot.slane %v774_v51, 5  ;;  %v783_v59 = vshrl.u32 %v722_v49, 16  ;;  %v786_v60 = vshll.u32 %v722_v49, 16  ;;  %v277_v18 = vld [vmem:[%s2237_s10 + $0x3c] sm:$0xf] }
  0x24   : > { %v331_v54 = vrot.slane %v330_v44, 4  ;;  %v779_v58 = vrot.slane %v777_v52, 6  ;;  %v312_v62 = vsel %vm2257_vm5, %v307_v46, %v311_v47  ;;  %v749_v0 = vshll.u32 %v718_v45, 16  ;;  %v279_v22 = vld [vmem:[%s2237_s10 + $0x44] sm:$0x1] }
  0x25   : > { %v748_v63 = vrot.slane %v746_v56, 5  ;;  %v755_v1 = vshrl.u32 %v719_v53, 16  ;;  %v321_v2 = vrot.slane %v320_v50, 4  ;;  %v758_v3 = vshll.u32 %v719_v53, 16  ;;  %v733_v35 = vld [vmem:[%s2237_s10 + $0x3c] sm:$0xe] }
  0x26   : > { %655 = vrot.lane.b32.xlu1 %v603_v43, %s2151_s11  ;;  %v336_v4 = vsel %vm2257_vm5, %v331_v54, %v335_v55  ;;  %v751_v5 = vrot.slane %v749_v0, 6  ;;  %v419_v7 = vshll.u32 %v278_v61, 16  ;;  %v780_v10 = vor.u32 %v779_v58, %v776_v57  ;;  %v551_v37 = vld [vmem:[%s2237_s10 + $0x14] sm:$0x1]  ;;  %v734_v43 = vld [vmem:[%s2237_s10 + $0x40] sm:$0xf] }
  0x27   : > { %v757_v6 = vrot.slane %v755_v1, 5  ;;  %v785_v11 = vrot.slane %v783_v59, 5  ;;  %v788_v12 = vrot.slane %v786_v60, 6  ;;  %v760_v13 = vrot.slane %v758_v3, 6  ;;  %v723_v46 = vld [vmem:[%s2237_s10 + $0x14] sm:$0x3] }
  0x28   : > { %v752_v14 = vor.u32 %v751_v5, %v748_v63  ;;  %v423_v15 = vshrl.u32 %v278_v61, 16  ;;  %v765_v19 = vshrl.u32 %v720_v9, 16  ;;  %v2298_v21 = vrot.slane %v419_v7, 5  ;;  %v269_v59 = vld [vmem:[%s2237_s10 + $0x1c] sm:$0xf] }
  0x29   : > { %v761_v17 = vor.u32 %v760_v13, %v757_v6  ;;  %v768_v24 = vshll.u32 %v720_v9, 16  ;;  %v326_v25 = vsel %vm2257_vm5, %v321_v2, %v2265_v36  ;;  %v781_v27 = vrot.slane %v780_v10, 4  ;;  %v562_v9 = vld [vmem:[%s2237_s10 + $0x40] sm:$0xf]  ;;  %v268_v10 = vld [vmem:[%s2237_s10 + $0x18] sm:$0xf] }
  0x2a   : > { %483 = vrot.lane.b32.xlu0 %v312_v62, %s2152_s12  ;;  %v753_v20 = vrot.slane %v752_v14, 4  ;;  %v425_v23 = vrot.slane %v423_v15, 4  ;;  %v789_v28 = vor.u32 %v788_v12, %v785_v11  ;;  %v767_v29 = vrot.slane %v765_v19, 5  ;;  %v270_v13 = vld [vmem:[%s2237_s10 + $0x20] sm:$0x1] }
  0x2b   : > { %v410_v32 = vshrl.u32 %v277_v18, 16  ;;  %v413_v33 = vshll.u32 %v277_v18, 16  ;;  %v770_v34 = vrot.slane %v768_v24, 6  ;;  %v429_v38 = vshll.u32 %v279_v22, 16  ;;  %v561_v18 = vld [vmem:[%s2237_s10 + $0x3c] sm:$0xe] }
  0x2c   : > { %v762_v31 = vsel %vm2292_vm8, %v753_v20, %v761_v17  ;;  %v426_v39 = vor.u32 %v425_v23, %v2298_v21  ;;  %v763_v36 = vrot.slane %v761_v17, 4  ;;  %v790_v42 = vsel %vm2292_vm8, %v781_v27, %v789_v28  ;;  %v735_v19 = vld [vmem:[%s2237_s10 + $0x44] sm:$0x3] }
  0x2d   : > { %969 = vrot.lane.b32.xlu2 %v762_v31, %s2153_s13  ;;  %v771_v40 = vor.u32 %v770_v34, %v767_v29  ;;  %v886_v44 = vshrl.u32 %v733_v35, 16  ;;  %v889_v45 = vshll.u32 %v733_v35, 16  ;;  %v608_v47 = vrot.slane %v606_v41, 4  ;;  %v563_v27 = vld [vmem:[%s2237_s10 + $0x44] sm:$0x1] }
  0x2e   : > { %487 = vrot.lane.b32.xlu1 %v336_v4, %s2152_s12  ;;  %v609_v48 = vrot.slane %v551_v37, 5  ;;  %v412_v49 = vrot.slane %v410_v32, 4  ;;  %v415_v50 = vrot.slane %v413_v33, 5  ;;  %v431_v51 = vrot.slane %v429_v38, 5 }
  0x2f   : > { %v427_v52 = vrot.slane %v426_v39, 4  ;;  %v772_v53 = vsel %vm2292_vm8, %v763_v36, %v771_v40  ;;  %v895_v54 = vshrl.u32 %v734_v43, 16  ;;  %v793_v55 = vshrl.u32 %v723_v46, 16  ;;  %v725_v40 = vld [vmem:[%s2237_s10 + $0x1c] sm:$0xf] }
  0x30   : > { %v888_v56 = vrot.slane %v886_v44, 5  ;;  %v891_v57 = vrot.slane %v889_v45, 6  ;;  %v898_v58 = vshll.u32 %v734_v43, 16  ;;  %v796_v60 = vshll.u32 %v723_v46, 16  ;;  %v281_v45 = vld [vmem:[%s2237_s10 + $0x4c] sm:$0xf] }
  0x31   : > { %v610_v30 = vsel %vm2243_vm4, %v608_v47, %v609_v48  ;;  %v416_v41 = vor.u32 %v415_v50, %v412_v49  ;;  %v795_v61 = vrot.slane %v793_v55, 5  ;;  %v432_v63 = vsel %vm2257_vm5, %v427_v52, %v431_v51 }
  0x32   : > { %485 = vrot.lane.b32.xlu0 %v326_v25, %s2152_s12  ;;  %v798_v62 = vrot.slane %v796_v60, 6  ;;  %v347_v0 = vshll.u32 %v269_v59, 16  ;;  %v351_v1 = vshrl.u32 %v269_v59, 16  ;;  %v791_v2 = vrot.slane %v789_v28, 4  ;;  %v724_v25 = vld [vmem:[%s2237_s10 + $0x18] sm:$0xe] }
  0x33   : > { %v892_v3 = vor.u32 %v891_v57, %v888_v56  ;;  %v897_v4 = vrot.slane %v895_v54, 5  ;;  %v900_v5 = vrot.slane %v898_v58, 6  ;;  %v417_v7 = vrot.slane %v416_v41, 4 }
  0x34   : > { %v799_v6 = vor.u32 %v798_v62, %v795_v61  ;;  %v2330_v11 = vrot.slane %v347_v0, 5  ;;  %v353_v14 = vrot.slane %v351_v1, 4  ;;  %v634_v22 = vrot.slane %v562_v9, 5  ;;  %v553_v61 = vld [vmem:[%s2237_s10 + $0x1c] sm:$0xf] }
  0x35   : > { %971 = vrot.lane.b32.xlu2 %v772_v53, %s2153_s13  ;;  %v893_v15 = vrot.slane %v892_v3, 4  ;;  %v901_v17 = vor.u32 %v900_v5, %v897_v4  ;;  %v422_v20 = vsel %vm2257_vm5, %v417_v7, %v2298_v21  ;;  %v338_v23 = vshrl.u32 %v268_v10, 16  ;;  %v280_v62 = vld [vmem:[%s2237_s10 + $0x48] sm:$0xf]  ;;  %v726_v7 = vld [vmem:[%s2237_s10 + $0x20] sm:$0x3] }
  0x36   : > { %973 = vrot.lane.b32.xlu1 %v790_v42, %s2153_s13  ;;  %v800_v12 = vsel %vm2292_vm8, %v791_v2, %v799_v6  ;;  %v341_v24 = vshll.u32 %v268_v10, 16  ;;  %v357_v28 = vshll.u32 %v270_v13, 16  ;;  %v354_v29 = vor.u32 %v353_v14, %v2330_v11  ;;  %v282_v2 = vld [vmem:[%s2237_s10 + $0x50] sm:$0x1]  ;;  %v736_v3 = vld [vmem:[%s2237_s10 + $0x48] sm:$0xe] }
  0x37   : > { %v1811_v31 = vrot.slane %v561_v18, 9  ;;  %v905_v32 = vshrl.u32 %v735_v19, 16  ;;  %v908_v33 = vshll.u32 %v735_v19, 16  ;;  %v902_v21 = vsel %vm2292_vm8, %v893_v15, %v901_v17  ;;  %v552_v6 = vld [vmem:[%s2237_s10 + $0x18] sm:$0xe] }
  0x38   : > { %v802_v34 = vshrl.u32 %v724_v25, 16  ;;  %v805_v35 = vshll.u32 %v724_v25, 16  ;;  %v636_v37 = vrot.slane %v634_v22, 4  ;;  %v637_v38 = vrot.slane %v563_v27, 5  ;;  %v554_v14 = vld [vmem:[%s2237_s10 + $0x20] sm:$0x1] }
  0x39   : > { %v340_v39 = vrot.slane %v338_v23, 4  ;;  %v343_v36 = vrot.slane %v341_v24, 5  ;;  %v359_v42 = vrot.slane %v357_v28, 5  ;;  %v355_v43 = vrot.slane %v354_v29, 4  ;;  %v737_v29 = vld [vmem:[%s2237_s10 + $0x4c] sm:$0xf] }
  0x3a   : > { %659 = vrot.lane.b32.xlu0 %v610_v30, %s2151_s11  ;;  %v635_v44 = vsel %vm2243_vm4, %v1811_v31, %v634_v22  ;;  %v907_v46 = vrot.slane %v905_v32, 5  ;;  %v910_v47 = vrot.slane %v908_v33, 6  ;;  %v804_v48 = vrot.slane %v802_v34, 5 }
  0x3b   : > { %v807_v49 = vrot.slane %v805_v35, 6  ;;  %v811_v50 = vshrl.u32 %v725_v40, 16  ;;  %v814_v51 = vshll.u32 %v725_v40, 16  ;;  %v638_v52 = vsel %vm2243_vm4, %v636_v37, %v637_v38 }
  0x3c   : > { %v344_v53 = vor.u32 %v343_v36, %v340_v39  ;;  %v443_v54 = vshll.u32 %v281_v45, 16  ;;  %v447_v55 = vshrl.u32 %v281_v45, 16  ;;  %v903_v56 = vrot.slane %v901_v17, 4 }
  0x3d   : > { %975 = vrot.lane.b32.xlu2 %v800_v12, %s2153_s13  ;;  %v911_v57 = vor.u32 %v910_v47, %v907_v46  ;;  %v360_v58 = vsel %vm2257_vm5, %v355_v43, %v359_v42  ;;  %v808_v59 = vor.u32 %v807_v49, %v804_v48  ;;  %v813_v60 = vrot.slane %v811_v50, 5  ;;  %v272_v42 = vld [vmem:[%s2237_s10 + $0x28] sm:$0xf] }
  0x3e   : > { %503 = vrot.lane.b32.xlu1 %v432_v63, %s2152_s12  ;;  %v816_v30 = vrot.slane %v814_v51, 6  ;;  %v345_v41 = vrot.slane %v344_v53, 4  ;;  %v2360_v63 = vrot.slane %v443_v54, 5  ;;  %v449_v0 = vrot.slane %v447_v55, 4  ;;  %v271_v53 = vld [vmem:[%s2237_s10 + $0x24] sm:$0xf] }
  0x3f   : > { %v912_v1 = vsel %vm2292_vm8, %v903_v56, %v911_v57  ;;  %v809_v4 = vrot.slane %v808_v59, 4  ;;  %v613_v10 = vrot.slane %v553_v61, 5  ;;  %v434_v12 = vshrl.u32 %v280_v62, 16  ;;  %v727_v56 = vld [vmem:[%s2237_s10 + $0x24] sm:$0xe] }
  0x40   : > { %v817_v5 = vor.u32 %v816_v30, %v813_v60  ;;  %v350_v9 = vsel %vm2257_vm5, %v345_v41, %v2330_v11  ;;  %v437_v13 = vshll.u32 %v280_v62, 16  ;;  %v450_v15 = vor.u32 %v449_v0, %v2360_v63  ;;  %v564_v60 = vld [vmem:[%s2237_s10 + $0x48] sm:$0xe]  ;;  %v738_v30 = vld [vmem:[%s2237_s10 + $0x50] sm:$0x3] }
  0x41   : > { %v453_v17 = vshll.u32 %v282_v2, 16  ;;  %v914_v18 = vshrl.u32 %v736_v3, 16  ;;  %v1808_v19 = vrot.slane %v552_v6, 9  ;;  %v821_v22 = vshrl.u32 %v726_v7, 16  ;;  %v566_v2 = vld [vmem:[%s2237_s10 + $0x50] sm:$0x1] }
  0x42   : > { %501 = vrot.lane.b32.xlu0 %v422_v20, %s2152_s12  ;;  %v917_v20 = vshll.u32 %v736_v3, 16  ;;  %v824_v23 = vshll.u32 %v726_v7, 16  ;;  %v818_v11 = vsel %vm2292_vm8, %v809_v4, %v817_v5  ;;  %v615_v24 = vrot.slane %v613_v10, 4  ;;  %v728_v6 = vld [vmem:[%s2237_s10 + $0x28] sm:$0xf] }
  0x43   : > { %v616_v25 = vrot.slane %v554_v14, 5  ;;  %v436_v27 = vrot.slane %v434_v12, 4  ;;  %v439_v28 = vrot.slane %v437_v13, 5  ;;  %v451_v31 = vrot.slane %v450_v15, 4  ;;  %v2009_v13 = vld [vmem:[%s2866_s1 + $0x38] sm:$0xff] }
  0x44   : > { %v455_v32 = vrot.slane %v453_v17, 5  ;;  %v916_v33 = vrot.slane %v914_v18, 5  ;;  %v919_v34 = vrot.slane %v917_v20, 6  ;;  %v823_v35 = vrot.slane %v821_v22, 5  ;;  %v2017_v14 = vld [vmem:[%s2866_s1 + $0x78] sm:$0xff]  ;;  %1414 = vmatpush.bf16.msra.mxu0 %v2009_v13  ;;  %2026 = vmatpush.bf16.msra.mxu3 %v2009_v13 }
  0x45   : > { %673 = vrot.lane.b32.xlu2 %v635_v44, %s2151_s11  ;;  %v826_v37 = vrot.slane %v824_v23, 6  ;;  %v923_v38 = vshrl.u32 %v737_v29, 16  ;;  %v926_v39 = vshll.u32 %v737_v29, 16  ;;  %v617_v36 = vsel %vm2243_vm4, %v615_v24, %v616_v25  ;;  %1463 = vmatpush.bf16.msra.mxu1 %v2017_v14 }
  0x46   : > { %989 = vrot.lane.b32.xlu1 %v902_v21, %s2153_s13  ;;  %v614_v21 = vsel %vm2243_vm4, %v1808_v19, %v613_v10  ;;  %v440_v40 = vor.u32 %v439_v28, %v436_v27  ;;  %v456_v43 = vsel %vm2257_vm5, %v451_v31, %v455_v32  ;;  %v920_v44 = vor.u32 %v919_v34, %v916_v33  ;;  %v283_v31 = vld [vmem:[%s2237_s10 + $0x54] sm:$0xf]  ;;  %v2427_v34 = vld [vmem:[%s2237_s10 + $0x28] sm:$0xf] }
  0x47   : > { %v819_v45 = vrot.slane %v817_v5, 4  ;;  %v827_v46 = vor.u32 %v826_v37, %v823_v35  ;;  %v925_v47 = vrot.slane %v923_v38, 5  ;;  %v928_v48 = vrot.slane %v926_v39, 6  ;;  %2034 = vmatpush.bf16.msra.mxu2 %v2017_v14 }
  0x48   : > { %v371_v49 = vshll.u32 %v272_v42, 16  ;;  %v375_v50 = vshrl.u32 %v272_v42, 16  ;;  %v441_v51 = vrot.slane %v440_v40, 4  ;;  %v921_v54 = vrot.slane %v920_v44, 4 }
  0x49   : > { %v828_v55 = vsel %vm2292_vm8, %v819_v45, %v827_v46  ;;  %v2395_v57 = vor.u32 %v928_v48, %v925_v47  ;;  %v362_v62 = vshrl.u32 %v271_v53, 16  ;;  %v365_v0 = vshll.u32 %v271_v53, 16  ;;  %v2008_v47 = vld [vmem:[%s2866_s1 + $0x30] sm:$0xff] }
  0x4a   : > { %675 = vrot.lane.b32.xlu0 %v638_v52, %s2151_s11  ;;  %v565_v52 = vld [vmem:[%s2237_s10 + $0x4c] sm:$0xf]  ;;  %v377_v59 = vrot.slane %v375_v50, 4  ;;  %v446_v41 = vsel %vm2257_vm5, %v441_v51, %v2360_v63  ;;  %v830_v3 = vshrl.u32 %v727_v56, 16  ;;  %v833_v4 = vshll.u32 %v727_v56, 16  ;;  %v2016_v48 = vld [vmem:[%s2866_s1 + $0x70] sm:$0xff]  ;;  %1415 = vmatpush.bf16.msra.mxu0 %v2008_v47 }
  0x4b   : > { %v641_v61 = vrot.slane %v565_v52, 5  ;;  %v1812_v5 = vrot.slane %v564_v60, 9  ;;  %v933_v7 = vshrl.u32 %v738_v30, 16  ;;  %v930_v10 = vsel %vm2292_vm8, %v921_v54, %v2395_v57  ;;  %1464 = vmatpush.bf16.msra.mxu1 %v2016_v48  ;;  %v2007_v54 = vld [vmem:[%s2866_s1 + $0x28] sm:$0xff]  ;;  %2027 = vmatpush.bf16.msra.mxu3 %v2008_v47 }
  0x4c   : > { %v644_v17 = vrot.slane %v566_v2, 5  ;;  %v364_v18 = vrot.slane %v362_v62, 4  ;;  %v367_v19 = vrot.slane %v365_v0, 5  ;;  %v832_v20 = vrot.slane %v830_v3, 5  ;;  %v555_v62 = vld [vmem:[%s2237_s10 + $0x24] sm:$0xe]  ;;  %2035 = vmatpush.bf16.msra.mxu2 %v2016_v48 }
  0x4d   : > { %991 = vrot.lane.b32.xlu2 %v912_v1, %s2153_s13  ;;  %v273_v1 = vld [vmem:[%s2237_s10 + $0x2c] sm:$0x1]  ;;  %v643_v15 = vrot.slane %v641_v61, 4  ;;  %v835_v22 = vrot.slane %v833_v4, 6  ;;  %v839_v23 = vshrl.u32 %v728_v6, 16  ;;  %v642_v24 = vsel %vm2243_vm4, %v1812_v5, %v641_v61 }
  0x4e   : > { %491 = vrot.lane.b32.xlu1 %v360_v58, %s2152_s12  ;;  %v2397_v58 = vrot.slane %v371_v49, 5  ;;  %v381_v12 = vshll.u32 %v273_v1, 16  ;;  %v935_v25 = vrot.slane %v933_v7, 5  ;;  %v368_v33 = vor.u32 %v367_v19, %v364_v18  ;;  %v729_v0 = vld [vmem:[%s2237_s10 + $0x2c] sm:$0x3]  ;;  %1416 = vmatpush.bf16.msra.mxu0 %v2007_v54 }
  0x4f   : > { %v645_v32 = vsel %vm2243_vm4, %v643_v15, %v644_v17  ;;  %v836_v35 = vor.u32 %v835_v22, %v832_v20  ;;  %v841_v37 = vrot.slane %v839_v23, 5  ;;  %v458_v39 = vshrl.u32 %v283_v31, 16  ;;  %v285_v2 = vld [vmem:[%s2237_s10 + $0x5c] sm:$0x1]  ;;  %2028 = vmatpush.bf16.msra.mxu3 %v2007_v54  ;;  %v2470_v15 = vld [vmem:[%s2237_s10 + $0x58] sm:$0xf] }
  0x50   : > { %v378_v63 = vor.u32 %v377_v59, %v2397_v58  ;;  %v383_v29 = vrot.slane %v381_v12, 5  ;;  %v931_v40 = vrot.slane %v2395_v57, 4  ;;  %v369_v49 = vrot.slane %v368_v33, 4  ;;  %v2473_v17 = vld [vmem:[%s2237_s10 + $0x5c] sm:$0x1]  ;;  %v2006_v22 = vld [vmem:[%s2866_s1 + $0x20] sm:$0xff] }
  0x51   : > { %v620_v50 = vrot.slane %v2427_v34, 5  ;;  %v837_v51 = vrot.slane %v836_v35, 4  ;;  %v460_v56 = vrot.slane %v458_v39, 4  ;;  %v1809_v7 = vrot.slane %v555_v62, 9  ;;  %v229_v18 = vld [vmem:[%s2237_s10] sm:$0xf] }
  0x52   : > { %489 = vrot.lane.b32.xlu0 %v350_v9, %s2152_s12  ;;  %v936_v9 = vshll.u32 %v738_v30, 16  ;;  %v379_v28 = vrot.slane %v378_v63, 4  ;;  %v2015_v30 = vld [vmem:[%s2866_s1 + $0x68] sm:$0xff]  ;;  %v374_v1 = vsel %vm2257_vm5, %v369_v49, %v2397_v58  ;;  %v849_v63 = vshrl.u32 %v729_v0, 16  ;;  %246 = vst.msk [vmem:[#allocation2] sm:$0xf] %vm245_vm9, %v229_v18  ;;  %1417 = vmatpush.bf16.msra.mxu0 %v2006_v22 }
  0x53   : > { %v622_v3 = vrot.slane %v620_v50, 4  ;;  %1465 = vmatpush.bf16.msra.mxu1 %v2015_v30  ;;  %v852_v58 = vshll.u32 %v729_v0, 16  ;;  %v477_v14 = vshll.u32 %v285_v2, 16  ;;  %2036 = vmatpush.bf16.msra.mxu2 %v2015_v30  ;;  %v2014_v23 = vld [vmem:[%s2866_s1 + $0x60] sm:$0xff]  ;;  %v651_v34 = vrot.slane %v2473_v17, 5 }
  0x54   : > { %v938_v27 = vrot.slane %v936_v9, 6  ;;  %v384_v44 = vsel %vm2257_vm5, %v379_v28, %v383_v29  ;;  %v740_v9 = vld [vmem:[%s2237_s10 + $0x58] sm:$0xf]  ;;  %v274_v35 = vld [vmem:[%s2237_s10 + $0x30] sm:$0xf]  ;;  %2029 = vmatpush.bf16.msra.mxu3 %v2006_v22 }
  0x55   : > { %661 = vrot.lane.b32.xlu2 %v614_v21, %s2151_s11  ;;  %v284_v21 = vld [vmem:[%s2237_s10 + $0x58] sm:$0xf]  ;;  %v951_v19 = vshrl.u32 %v740_v9, 16  ;;  %v954_v20 = vshll.u32 %v740_v9, 16  ;;  %v854_v28 = vrot.slane %v852_v58, 6  ;;  %v386_v49 = vshrl.u32 %v274_v35, 16 }
  0x56   : > { %977 = vrot.lane.b32.xlu1 %v818_v11, %s2153_s13  ;;  %v842_v11 = vshll.u32 %v728_v6, 16  ;;  %v939_v42 = vor.u32 %v938_v27, %v935_v25  ;;  %v467_v45 = vshll.u32 %v284_v21, 16  ;;  %v471_v46 = vshrl.u32 %v284_v21, 16  ;;  %v275_v25 = vld [vmem:[%s2237_s10 + $0x34] sm:$0xf]  ;;  %v2003_v9 = vld [vmem:[%s2866_s1 + $0x8] sm:$0xff] }
  0x57   : > { %v851_v27 = vrot.slane %v849_v63, 5  ;;  %1466 = vmatpush.bf16.msra.mxu1 %v2014_v23  ;;  %v648_v21 = vrot.slane %v2470_v15, 5  ;;  %2037 = vmatpush.bf16.msra.mxu2 %v2014_v23  ;;  %v953_v39 = vrot.slane %v951_v19, 5  ;;  %v730_v54 = vld [vmem:[%s2237_s10 + $0x30] sm:$0xe] }
  0x58   : > { %v844_v38 = vrot.slane %v842_v11, 6  ;;  %v940_v59 = vsel %vm2292_vm8, %v931_v40, %v939_v42  ;;  %v473_v61 = vrot.slane %v471_v46, 4  ;;  %v621_v11 = vsel %vm2243_vm4, %v1809_v7, %v620_v50  ;;  %v276_v7 = vld [vmem:[%s2237_s10 + $0x38] sm:$0x1] }
  0x59   : > { %v395_v40 = vshll.u32 %v275_v25, 16  ;;  %v399_v42 = vshrl.u32 %v275_v25, 16  ;;  %v855_v46 = vor.u32 %v854_v28, %v851_v27  ;;  %v389_v50 = vshll.u32 %v274_v35, 16  ;;  %v2002_v35 = vld [vmem:[%s2866_s1] sm:$0xff] }
  0x5a   : > { %663 = vrot.lane.b32.xlu0 %v617_v36, %s2151_s11  ;;  %v461_v36 = vshll.u32 %v283_v31, 16  ;;  %v2442_v52 = vor.u32 %v844_v38, %v841_v37  ;;  %v2005_v37 = vld [vmem:[%s2866_s1 + $0x18] sm:$0xff]  ;;  %v650_v18 = vrot.slane %v648_v21, 4  ;;  %v2154_v27 = vmov 0  }
  0x5b   : > { %v2013_v38 = vld [vmem:[%s2866_s1 + $0x58] sm:$0xff]  ;;  %1418 = vmatpush.bf16.msra.mxu0 %v2005_v37  ;;  %2030 = vmatpush.bf16.msra.mxu3 %v2005_v37  ;;  %v2010_v37 = vld [vmem:[%s2866_s1 + $0x40] sm:$0xff] }
  0x5c   : > { %v463_v57 = vrot.slane %v461_v36, 5  ;;  %v846_v5 = vsel %vm2292_vm8, %v837_v51, %v2442_v52  ;;  %v956_v36 = vrot.slane %v954_v20, 6  ;;  %v1034_v51 = vld [vmem:[%s2237_s10] sm:$0xc]  ;;  %1467 = vmatpush.bf16.msra.mxu1 %v2013_v38  ;;  %2038 = vmatpush.bf16.msra.mxu2 %v2013_v38 }
  0x5d   : > { %979 = vrot.lane.b32.xlu2 %v828_v55, %s2153_s13  ;;  %v557_v55 = vld [vmem:[%s2237_s10 + $0x2c] sm:$0x1] }
  0x5e   : > { %507 = vrot.lane.b32.xlu1 %v456_v43, %s2152_s12  ;;  %v739_v43 = vld [vmem:[%s2237_s10 + $0x54] sm:$0xe]  ;;  %v623_v4 = vrot.slane %v557_v55, 5  ;;  %v464_v12 = vor.u32 %v463_v57, %v460_v56  ;;  %v230_v55 = vld [vmem:[%s2237_s10 + $0x4] sm:$0xf]  ;;  %v2514_v56 = vrot.slane %v399_v42, 4  ;;  %v2534_v2 = vor.u32 %v956_v36, %v953_v39 }
  0x5f   : > { %v942_v53 = vshrl.u32 %v739_v43, 16  ;;  %v945_v60 = vshll.u32 %v739_v43, 16  ;;  %v1035_v43 = vld [vmem:[%s2237_s10 + $0x4] sm:$0xf]  ;;  %247 = vst.msk [vmem:[#allocation2 + $0x8] sm:$0xf] %vm245_vm9, %v230_v55 }
  0x60   : > { %v2487_v29 = vrot.slane %v464_v12, 4  ;;  %v624_v33 = vsel %vm2243_vm4, %v622_v3, %v623_v4  ;;  %v1087_v47 = vrot.slane %v1035_v43, 6  ;;  %v2004_v57 = vld [vmem:[%s2866_s1 + $0x10] sm:$0xff]  ;;  %v858_v4 = vshrl.u32 %v730_v54, 16 }
  0x61   : > { %v944_v6 = vrot.slane %v942_v53, 5  ;;  %v1036_v53 = vld [vmem:[%s2237_s10 + $0x8] sm:$0x3]  ;;  %v567_v3 = vld [vmem:[%s2237_s10 + $0x54] sm:$0xe]  ;;  %1419 = vmatpush.bf16.msra.mxu0 %v2004_v57  ;;  %2031 = vmatpush.bf16.msra.mxu3 %v2004_v57  ;;  %v388_v12 = vrot.slane %v386_v49, 4 }
  0x62   : > { %505 = vrot.lane.b32.xlu0 %v446_v41, %s2152_s12  ;;  %v2454_v41 = vrot.slane %v467_v45, 5  ;;  %v847_v45 = vrot.slane %v2442_v52, 4  ;;  %v2512_v52 = vrot.slane %v395_v40, 5  ;;  %v1089_v62 = vrot.slane %v1087_v47, 4  ;;  %v1039_v55 = vld [vmem:[%s2237_s10 + $0x14] sm:$0x3] }
  0x63   : > { %v1090_v0 = vrot.slane %v1036_v53, 6  ;;  %v1813_v19 = vrot.slane %v567_v3, 9  ;;  %v860_v25 = vrot.slane %v858_v4, 5  ;;  %v558_v4 = vld [vmem:[%s2237_s10 + $0x30] sm:$0xe] }
  0x64   : > { %v474_v13 = vor.u32 %v473_v61, %v2454_v41  ;;  %v856_v30 = vsel %vm2292_vm8, %v847_v45, %v855_v46  ;;  %v1814_v61 = vrot.slane %v1034_v51, 10  ;;  %v1038_v46 = vld [vmem:[%s2237_s10 + $0x10] sm:$0xf] }
  0x65   : > { %677 = vrot.lane.b32.xlu2 %v642_v24, %s2151_s11  ;;  %v1091_v63 = vsel %vm2523_vm12, %v1089_v62, %v1090_v0  ;;  %1420 = vmatpush.bf16.msra.mxu0 %v2003_v9  ;;  %v649_v38 = vsel %vm2243_vm4, %v1813_v19, %v648_v21 }
  0x66   : > { %993 = vrot.lane.b32.xlu1 %v930_v10, %s2153_s13  ;;  %v947_v10 = vrot.slane %v945_v60, 6  ;;  %v475_v31 = vrot.slane %v474_v13, 4  ;;  %v391_v13 = vrot.slane %v389_v50, 5  ;;  %1158 = vst.msk [vmem:[#allocation2 + $0xc] sm:$0xf] %vm245_vm9, %v1091_v63  ;;  %2032 = vmatpush.bf16.msra.mxu3 %v2003_v9  ;;  %v1094_v50 = vrot.slane %v1038_v46, 6 }
  0x67   : > { %1175 = vst.msk [vmem:[#allocation2 + $0xc] sm:$0xf] %vm1173_vm13, %v2154_v27  ;;  %v233_v46 = vld [vmem:[%s2237_s10 + $0x18] sm:$0xf] }
  0x68   : > { %v948_v24 = vor.u32 %v947_v10, %v944_v6  ;;  %v741_v6 = vld [vmem:[%s2237_s10 + $0x5c] sm:$0x3]  ;;  %v2011_v10 = vld [vmem:[%s2866_s1 + $0x48] sm:$0xff]  ;;  %250 = vst.msk [vmem:[#allocation2 + $0x20] sm:$0xf] %vm245_vm9, %v233_v46 }
  0x69   : > { %v961_v20 = vshrl.u32 %v741_v6, 16  ;;  %v964_v22 = vshll.u32 %v741_v6, 16  ;;  %1421 = vmatpush.bf16.msra.mxu0 %v2002_v35 }
  0x6a   : > { %679 = vrot.lane.b32.xlu0 %v645_v32, %s2151_s11  ;;  %v479_v32 = vrot.slane %v477_v14, 5  ;;  %v731_v14 = vld [vmem:[%s2237_s10 + $0x34] sm:$0xf]  ;;  %2033 = vmatpush.bf16.msra.mxu3 %v2002_v35 }
  0x6b   : > { %v870_v39 = vshll.u32 %v731_v14, 16  ;;  %v963_v36 = vrot.slane %v961_v20, 5  ;;  %v966_v40 = vrot.slane %v964_v22, 6 }
  0x6c   : > { %v480_v48 = vsel %vm2257_vm5, %v475_v31, %v479_v32  ;;  %v231_v31 = vld [vmem:[%s2237_s10 + $0xc] sm:$0xf]  ;;  %v392_v32 = vor.u32 %v391_v13, %v388_v12 }
  0x6d   : > { %995 = vrot.lane.b32.xlu2 %v940_v59, %s2153_s13  ;;  %v2012_v59 = vld [vmem:[%s2866_s1 + $0x50] sm:$0xff]  ;;  %248 = vst.msk [vmem:[#allocation2 + $0x10] sm:$0xf] %vm245_vm9, %v231_v31  ;;  %v967_v49 = vor.u32 %v966_v40, %v963_v36 }
  0x6e   : > { %495 = vrot.lane.b32.xlu1 %v384_v44, %s2152_s12  ;;  %v2502_v44 = vrot.slane %v948_v24, 4  ;;  %1468 = vmatpush.bf16.msra.mxu1 %v2012_v59  ;;  %v405_v24 = vshll.u32 %v276_v7, 16  ;;  %v393_v15 = vrot.slane %v392_v32, 4  ;;  %v1826_v53 = vld [vmem:[#allocation2 + $0x8] sm:$0xf0] }
  0x6f   : > { %2039 = vmatpush.bf16.msra.mxu2 %v2012_v59  ;;  %v1096_v59 = vrot.slane %v1094_v50, 4 }
  0x70   : > { %v958_v23 = vsel %vm2292_vm8, %v2502_v44, %v2534_v2  ;;  %v407_v43 = vrot.slane %v405_v24, 5  ;;  %v652_v44 = vsel %vm2243_vm4, %v650_v18, %v651_v34  ;;  %v398_v6 = vsel %vm2257_vm5, %v393_v15, %v2512_v52  ;;  %v239_v18 = vld [vmem:[%s2237_s10 + $0x3c] sm:$0xf] }
  0x71   : > { %256 = vst.msk [vmem:[#allocation2 + $0x50] sm:$0xf] %vm245_vm9, %v239_v18 }
  0x72   : > { %493 = vrot.lane.b32.xlu0 %v374_v1, %s2152_s12  ;;  %v470_v1 = vsel %vm2257_vm5, %v2487_v29, %v2454_v41  ;;  %v1088_v41 = vsel %vm2523_vm12, %v1814_v61, %v1087_v47  ;;  %v867_v29 = vshrl.u32 %v731_v14, 16  ;;  %1469 = vmatpush.bf16.msra.mxu1 %v2011_v10  ;;  %v872_v47 = vrot.slane %v870_v39, 6  ;;  %v559_v61 = vld [vmem:[%s2237_s10 + $0x34] sm:$0xf]  ;;  %v1051_v39 = vld [vmem:[%s2237_s10 + $0x44] sm:$0x3] }
  0x73   : > { %1157 = vst.msk [vmem:[#allocation2 + $0x4] sm:$0xf] %vm245_vm9, %v1088_v41  ;;  %2040 = vmatpush.bf16.msra.mxu2 %v2011_v10  ;;  %v627_v9 = vrot.slane %v559_v61, 5  ;;  %v560_v10 = vld [vmem:[%s2237_s10 + $0x38] sm:$0x1]  ;;  %v1810_v41 = vrot.slane %v558_v4, 9 }
  0x74   : > { %1174 = vst.msk [vmem:[#allocation2 + $0x4] sm:$0xf] %vm1173_vm13, %v2154_v27  ;;  %v869_v45 = vrot.slane %v867_v29, 5  ;;  %v630_v14 = vrot.slane %v560_v10, 5  ;;  %v1050_v29 = vld [vmem:[%s2237_s10 + $0x40] sm:$0xf] }
  0x75   : > { %665 = vrot.lane.b32.xlu2 %v621_v11, %s2151_s11  ;;  %v402_v11 = vor.u32 %v2514_v56, %v2512_v52  ;;  %v629_v13 = vrot.slane %v627_v9, 4  ;;  %v628_v20 = vsel %vm2243_vm4, %v1810_v41, %v627_v9  ;;  %v1122_v32 = vrot.slane %v1050_v29, 6  ;;  %v242_v9 = vld [vmem:[%s2237_s10 + $0x4c] sm:$0xf] }
  0x76   : > { %981 = vrot.lane.b32.xlu1 %v846_v5, %s2153_s13  ;;  %v861_v5 = vshll.u32 %v730_v54, 16  ;;  %1470 = vmatpush.bf16.msra.mxu1 %v2010_v37  ;;  %v1037_v54 = vld [vmem:[%s2237_s10 + $0xc] sm:$0xc]  ;;  %v873_v3 = vor.u32 %v872_v47, %v869_v45  ;;  %259 = vst.msk [vmem:[#allocation2 + $0x68] sm:$0xf] %vm245_vm9, %v242_v9 }
  0x77   : > { %v403_v42 = vrot.slane %v402_v11, 4  ;;  %2041 = vmatpush.bf16.msra.mxu2 %v2010_v37  ;;  %v1815_v57 = vrot.slane %v1037_v54, 10  ;;  %v240_v11 = vld [vmem:[%s2237_s10 + $0x40] sm:$0xf]  ;;  %v631_v24 = vsel %vm2243_vm4, %v629_v13, %v630_v14  ;;  %v1124_v8 = vrot.slane %v1122_v32, 4 }
  0x78   : > { %v863_v28 = vrot.slane %v861_v5, 6  ;;  %v732_v5 = vld [vmem:[%s2237_s10 + $0x38] sm:$0x3]  ;;  %257 = vst.msk [vmem:[#allocation2 + $0x58] sm:$0xf] %vm245_vm9, %v240_v11  ;;  %vm1652_vm4 = vcmask 1044484  }
  0x79   : > { %v408_v34 = vsel %vm2257_vm5, %v403_v42, %v407_v43  ;;  %v877_v63 = vshrl.u32 %v732_v5, 16  ;;  %v880_v12 = vshll.u32 %v732_v5, 16  ;;  %v1125_v42 = vrot.slane %v1051_v39, 6  ;;  %v1040_v54 = vld [vmem:[%s2237_s10 + $0x18] sm:$0xc] }
  0x7a   : > { %667 = vrot.lane.b32.xlu0 %v624_v33, %s2151_s11  ;;  %v232_v33 = vld [vmem:[%s2237_s10 + $0x10] sm:$0xf]  ;;  %v864_v21 = vor.u32 %v863_v28, %v860_v25  ;;  %v1052_v13 = vld [vmem:[%s2237_s10 + $0x48] sm:$0xc]  ;;  %vm1654_vm5 = vcmask 1045509  }
  0x7b   : > { %249 = vst.msk [vmem:[#allocation2 + $0x18] sm:$0xf] %vm245_vm9, %v232_v33  ;;  %v1986_v17 = vld [vmem:[#allocation2 + $0x4] sm:$0xf]  ;;  %v879_v22 = vrot.slane %v877_v63, 5  ;;  %v875_v33 = vrot.slane %v873_v3, 4  ;;  %v1126_v45 = vsel %vm2523_vm12, %v1124_v8, %v1125_v42 }
  0x7c   : > { %v1829_v56 = vor.u32 %v1986_v17, %v1826_v53  ;;  %v865_v62 = vrot.slane %v864_v21, 4  ;;  %1168 = vst.msk [vmem:[#allocation2 + $0x5c] sm:$0xf] %vm245_vm9, %v1126_v45  ;;  %v1054_v14 = vld [vmem:[%s2237_s10 + $0x50] sm:$0x3] }
  0x7d   : > { %v2549_v58 = vpop.permute.xlu2 %657  ;;  %983 = vrot.lane.b32.xlu2 %v856_v30, %s2153_s13  ;;  %v1097_v30 = vrot.slane %v1039_v55, 6  ;;  %1185 = vst.msk [vmem:[#allocation2 + $0x5c] sm:$0xf] %vm1173_vm13, %v2154_v27  ;;  %v1042_v55 = vld [vmem:[%s2237_s10 + $0x20] sm:$0x3] }
  0x7e   : > { %511 = vrot.lane.b32.xlu1 %v480_v48, %s2152_s12  ;;  %v959_v48 = vrot.slane %v2534_v2, 4  ;;  %1471 = vmatmul.bf16.vlgmr.msra.gmra.mxu1 %v1829_v56  ;;  %v874_v26 = vsel %vm2292_vm8, %v865_v62, %v873_v3 }
  0x7f   : > { %v1098_v2 = vsel %vm2523_vm12, %v1096_v59, %v1097_v30  ;;  %v1104_v30 = vrot.slane %v1042_v55, 6 }
  0x80   : > { %v968_v0 = vsel %vm2292_vm8, %v959_v48, %v967_v49  ;;  %1160 = vst.msk [vmem:[#allocation2 + $0x1c] sm:$0xf] %vm245_vm9, %v1098_v2  ;;  %v234_v49 = vld [vmem:[%s2237_s10 + $0x1c] sm:$0xf] }
  0x81   : > { %1177 = vst.msk [vmem:[#allocation2 + $0x1c] sm:$0xf] %vm1173_vm13, %v2154_v27 }
  0x82   : > { %509 = vrot.lane.b32.xlu0 %v470_v1, %s2152_s12  ;;  %v1095_v1 = vsel %vm2523_vm12, %v1815_v57, %v1094_v50  ;;  %251 = vst.msk [vmem:[#allocation2 + $0x28] sm:$0xf] %vm245_vm9, %v234_v49  ;;  %v1816_v57 = vrot.slane %v1040_v54, 10  ;;  %v244_v54 = vld [vmem:[%s2237_s10 + $0x58] sm:$0xf] }
  0x83   : > { %1159 = vst.msk [vmem:[#allocation2 + $0x14] sm:$0xf] %vm245_vm9, %v1095_v1 }
  0x84   : > { %1176 = vst.msk [vmem:[#allocation2 + $0x14] sm:$0xf] %vm1173_vm13, %v2154_v27  ;;  %v1866_v2 = vld [vmem:[#allocation2 + $0x58] sm:$0xf0] }
  0x85   : > { %681 = vrot.lane.b32.xlu2 %v649_v38, %s2151_s11  ;;  %v1049_v38 = vld [vmem:[%s2237_s10 + $0x3c] sm:$0xc]  ;;  %261 = vst.msk [vmem:[#allocation2 + $0x78] sm:$0xf] %vm245_vm9, %v244_v54 }
  0x86   : > { %997 = vrot.lane.b32.xlu1 %v958_v23, %s2153_s13  ;;  %v882_v23 = vrot.slane %v880_v12, 6  ;;  %v1819_v40 = vrot.slane %v1049_v38, 10  ;;  %v1053_v12 = vld [vmem:[%s2237_s10 + $0x4c] sm:$0xf] }
  0x87   : > { %v970_v51 = vpop.permute.xlu2 %969 }
  0x88   : > { %v1834_v31 = vld [vmem:[#allocation2 + $0x18] sm:$0xf0]  ;;  %v883_v35 = vor.u32 %v882_v23, %v879_v22  ;;  %v1123_v15 = vsel %vm2523_vm12, %v1819_v40, %v1122_v32  ;;  %v1132_v22 = vrot.slane %v1054_v14, 6  ;;  %v235_v32 = vld [vmem:[%s2237_s10 + $0x24] sm:$0xf] }
  0x89   : > { %1167 = vst.msk [vmem:[#allocation2 + $0x54] sm:$0xf] %vm245_vm9, %v1123_v15  ;;  %v1044_v40 = vld [vmem:[%s2237_s10 + $0x28] sm:$0xf] }
  0x8a   : > { %683 = vrot.lane.b32.xlu0 %v652_v44, %s2151_s11  ;;  %v884_v44 = vsel %vm2292_vm8, %v875_v33, %v883_v35  ;;  %1184 = vst.msk [vmem:[#allocation2 + $0x54] sm:$0xf] %vm1173_vm13, %v2154_v27  ;;  %v236_v35 = vld [vmem:[%s2237_s10 + $0x28] sm:$0xf]  ;;  %v1108_v8 = vrot.slane %v1044_v40, 6 }
  0x8b   : > { %v1988_v28 = vld [vmem:[#allocation2 + $0x14] sm:$0xf]  ;;  %252 = vst.msk [vmem:[#allocation2 + $0x30] sm:$0xf] %vm245_vm9, %v235_v32 }
  0x8c   : > { %v1837_v37 = vor.u32 %v1988_v28, %v1834_v31  ;;  %253 = vst.msk [vmem:[#allocation2 + $0x38] sm:$0xf] %vm245_vm9, %v236_v35  ;;  %v1110_v45 = vrot.slane %v1108_v8, 4 }
  0x8d   : > { %999 = vrot.lane.b32.xlu2 %v968_v0, %s2153_s13 }
  0x8e   : > { %499 = vrot.lane.b32.xlu1 %v408_v34, %s2152_s12  ;;  %1476 = vmatmul.bf16.gmra.mxu1 %v1837_v37 }
  0x8f   : > { %v972_v52 = vpop.permute.xlu2 %971 }
  0x90   : > { %v654_v7 = vpop.permute.xlu1 %653 }
  0x91   : > { %v1996_v62 = vld [vmem:[#allocation2 + $0x54] sm:$0xf] }
  0x92   : > { %497 = vrot.lane.b32.xlu0 %v398_v6, %s2152_s12  ;;  %v1869_v3 = vor.u32 %v1996_v62, %v1866_v2  ;;  %v241_v6 = vld [vmem:[%s2237_s10 + $0x48] sm:$0xf]  ;;  %v1055_v62 = vld [vmem:[%s2237_s10 + $0x54] sm:$0xc]  ;;  %s2107_s12 = scalar_lea.hbm %s2870_s5, 16 }
  0x93   : > { %258 = vst.msk [vmem:[#allocation2 + $0x60] sm:$0xf] %vm245_vm9, %v241_v6  ;;  %v1821_v2 = vrot.slane %v1055_v62, 10 }
  0x94   : > { %v482_v19 = vpop.permute.xlu0 %481  ;;  %1496 = vmatmul.bf16.vlgmr.msra.gmra.mxu2 %v1869_v3 }
  0x95   : > { %530 = vst.msk [vmem:[#allocation2] sm:$0xf] %vm529_vm14, %v482_v19  ;;  %669 = vrot.lane.b32.xlu2 %v628_v20, %s2151_s11  ;;  %v1820_v19 = vrot.slane %v1052_v13, 10 }
  0x96   : > { %985 = vrot.lane.b32.xlu1 %v874_v26, %s2153_s13  ;;  %702 = vst.msk [vmem:[#allocation2] sm:$0xf] %vm701_vm15, %v654_v7  ;;  %v1129_v26 = vrot.slane %v1053_v12, 6  ;;  %v1046_v12 = vld [vmem:[%s2237_s10 + $0x30] sm:$0xc] }
  0x97   : > { %1018 = vst.msk [vmem:[#allocation2] sm:$0xf] %vm1017_vm0, %v970_v51  ;;  %v976_v36 = vpop.permute.xlu2 %975  ;;  %v1041_v51 = vld [vmem:[%s2237_s10 + $0x1c] sm:$0xf]  ;;  %v1818_v13 = vrot.slane %v1046_v12, 10 }
  0x98   : > { %v656_v25 = vpop.permute.xlu1 %655  ;;  %v1101_v53 = vrot.slane %v1041_v51, 6  ;;  %v1131_v20 = vrot.slane %v1129_v26, 4  ;;  %v243_v51 = vld [vmem:[%s2237_s10 + $0x54] sm:$0xf] }
  0x99   : > { %260 = vst.msk [vmem:[#allocation2 + $0x70] sm:$0xf] %vm245_vm9, %v243_v51 }
  0x9a   : > { %671 = vrot.lane.b32.xlu0 %v631_v24, %s2151_s11  ;;  %v1103_v59 = vrot.slane %v1101_v53, 4  ;;  %v1102_v61 = vsel %vm2523_vm12, %v1816_v57, %v1101_v53  ;;  %v1133_v28 = vsel %vm2523_vm12, %v1131_v20, %v1132_v22 }
  0x9b   : > { %1161 = vst.msk [vmem:[#allocation2 + $0x24] sm:$0xf] %vm245_vm9, %v1102_v61 }
  0x9c   : > { %v484_v43 = vpop.permute.xlu0 %483  ;;  %v1105_v0 = vsel %vm2523_vm12, %v1103_v59, %v1104_v30  ;;  %1178 = vst.msk [vmem:[#allocation2 + $0x24] sm:$0xf] %vm1173_vm13, %v2154_v27  ;;  %v1056_v59 = vld [vmem:[%s2237_s10 + $0x58] sm:$0xf] }
  0x9d   : > { %531 = vst.msk [vmem:[#allocation2 + $0x8] sm:$0xf] %vm529_vm14, %v484_v43  ;;  %987 = vrot.lane.b32.xlu2 %v884_v44, %s2153_s13  ;;  %v1043_v43 = vld [vmem:[%s2237_s10 + $0x24] sm:$0xc]  ;;  %v1045_v44 = vld [vmem:[%s2237_s10 + $0x2c] sm:$0x3] }
  0x9e   : > { %703 = vst.msk [vmem:[#allocation2 + $0x8] sm:$0xf] %vm701_vm15, %v656_v25  ;;  %v1824_v48 = vld [vmem:[#allocation2] sm:$0xf]  ;;  %v1130_v25 = vsel %vm2523_vm12, %v1820_v19, %v1129_v26  ;;  %v1136_v30 = vrot.slane %v1056_v59, 6 }
  0x9f   : > { %1019 = vst.msk [vmem:[#allocation2 + $0x8] sm:$0xf] %vm1017_vm0, %v972_v52  ;;  %v674_v16 = vpop.permute.xlu2 %673  ;;  %v1048_v26 = vld [vmem:[%s2237_s10 + $0x38] sm:$0x3] }
  0xa0   : > { %v488_v21 = vpop.permute.xlu1 %487  ;;  %1162 = vst.msk [vmem:[#allocation2 + $0x2c] sm:$0xf] %vm245_vm9, %v1105_v0  ;;  %v1057_v0 = vld [vmem:[%s2237_s10 + $0x5c] sm:$0x3]  ;;  %v1138_v3 = vrot.slane %v1136_v30, 4  ;;  %v1118_v20 = vrot.slane %v1048_v26, 6 }
  0xa1   : > { %533 = vst.msk [vmem:[#allocation2 + $0x18] sm:$0xf] %vm529_vm14, %v488_v21  ;;  %v1817_v21 = vrot.slane %v1043_v43, 10 }
  0xa2   : > { %1179 = vst.msk [vmem:[#allocation2 + $0x2c] sm:$0xf] %vm1173_vm13, %v2154_v27 }
  0xa3   : > { %v1990_v52 = vld [vmem:[#allocation2 + $0x24] sm:$0xf]  ;;  %1169 = vst.msk [vmem:[#allocation2 + $0x64] sm:$0xf] %vm245_vm9, %v1130_v25 }
  0xa4   : > { %v486_v47 = vpop.permute.xlu0 %485  ;;  %1170 = vst.msk [vmem:[#allocation2 + $0x6c] sm:$0xf] %vm245_vm9, %v1133_v28 }
  0xa5   : > { %532 = vst.msk [vmem:[#allocation2 + $0x10] sm:$0xf] %vm529_vm14, %v486_v47 }
  0xa6   : > { %704 = vst.msk [vmem:[#allocation2 + $0x10] sm:$0xf] %vm701_vm15, %v2549_v58  ;;  %v1987_v17 = vld [vmem:[#allocation2 + $0x4] sm:$0xf0] }
  0xa7   : > { %v1825_v50 = vor.u32 %v1987_v17, %v1824_v48  ;;  %v992_v56 = vpop.permute.xlu2 %991  ;;  %1186 = vst.msk [vmem:[#allocation2 + $0x64] sm:$0xf] %vm1173_vm13, %v2154_v27  ;;  %v1109_v48 = vsel %vm2523_vm12, %v1817_v21, %v1108_v8 }
  0xa8   : > { %v974_v34 = vpop.permute.xlu1 %973  ;;  %1187 = vst.msk [vmem:[#allocation2 + $0x6c] sm:$0xf] %vm1173_vm13, %v2154_v27 }
  0xa9   : > { %1020 = vst.msk [vmem:[#allocation2 + $0x10] sm:$0xf] %vm1017_vm0, %v974_v34  ;;  %1422 = vmatmul.bf16.vlgmr.msra.gmra.mxu0 %v1825_v50  ;;  %v1842_v18 = vld [vmem:[#allocation2 + $0x28] sm:$0xf0] }
  0xaa   : > { %v1845_v11 = vor.u32 %v1990_v52, %v1842_v18  ;;  %1163 = vst.msk [vmem:[#allocation2 + $0x34] sm:$0xf] %vm245_vm9, %v1109_v48  ;;  %v237_v18 = vld [vmem:[%s2237_s10 + $0x30] sm:$0xf] }
  0xab   : > { %1180 = vst.msk [vmem:[#allocation2 + $0x34] sm:$0xf] %vm1173_vm13, %v2154_v27 }
  0xac   : > { %v660_v58 = vpop.permute.xlu0 %659  ;;  %1481 = vmatmul.bf16.gmra.mxu1 %v1845_v11  ;;  %254 = vst.msk [vmem:[#allocation2 + $0x40] sm:$0xf] %vm245_vm9, %v237_v18 }
  0xad   : > { %705 = vst.msk [vmem:[#allocation2 + $0x18] sm:$0xf] %vm701_vm15, %v660_v58 }
  0xae   : > { %1021 = vst.msk [vmem:[#allocation2 + $0x18] sm:$0xf] %vm1017_vm0, %v976_v36  ;;  %v1998_v42 = vld [vmem:[#allocation2 + $0x64] sm:$0xf] }
  0xaf   : > { %v662_v4 = vpop.permute.xlu2 %661  ;;  %v1874_v15 = vld [vmem:[#allocation2 + $0x68] sm:$0xf0] }
  0xb0   : > { %v504_v1 = vpop.permute.xlu1 %503  ;;  %v1832_v5 = vld [vmem:[#allocation2 + $0x10] sm:$0xf]  ;;  %v1877_v46 = vor.u32 %v1998_v42, %v1874_v15 }
  0xb1   : > { %541 = vst.msk [vmem:[#allocation2 + $0x58] sm:$0xf] %vm529_vm14, %v504_v1 }
  0xb2   : > { %1501 = vmatmul.bf16.gmra.mxu2 %v1877_v46  ;;  %v1992_v61 = vld [vmem:[#allocation2 + $0x34] sm:$0xf] }
  0xb4   : > { %v502_v7 = vpop.permute.xlu0 %501 }
  0xb5   : > { %540 = vst.msk [vmem:[#allocation2 + $0x50] sm:$0xf] %vm529_vm14, %v502_v7  ;;  %v1989_v10 = vld [vmem:[#allocation2 + $0x14] sm:$0xf0]  ;;  %v1137_v7 = vsel %vm2523_vm12, %v1821_v2, %v1136_v30 }
  0xb6   : > { %712 = vst.msk [vmem:[#allocation2 + $0x50] sm:$0xf] %vm701_vm15, %v674_v16  ;;  %v1833_v41 = vor.u32 %v1989_v10, %v1832_v5  ;;  %v1111_v16 = vrot.slane %v1045_v44, 6 }
  0xb7   : > { %v980_v23 = vpop.permute.xlu2 %979  ;;  %1171 = vst.msk [vmem:[#allocation2 + $0x74] sm:$0xf] %vm245_vm9, %v1137_v7 }
  0xb8   : > { %v990_v63 = vpop.permute.xlu1 %989  ;;  %v1112_v49 = vsel %vm2523_vm12, %v1110_v45, %v1111_v16  ;;  %1188 = vst.msk [vmem:[#allocation2 + $0x74] sm:$0xf] %vm1173_vm13, %v2154_v27 }
  0xb9   : > { %1028 = vst.msk [vmem:[#allocation2 + $0x50] sm:$0xf] %vm1017_vm0, %v990_v63  ;;  %1427 = vmatmul.bf16.gmra.mxu0 %v1833_v41  ;;  %v1047_v41 = vld [vmem:[%s2237_s10 + $0x34] sm:$0xf] }
  0xba   : > { %1164 = vst.msk [vmem:[#allocation2 + $0x3c] sm:$0xf] %vm245_vm9, %v1112_v49  ;;  %v1115_v63 = vrot.slane %v1047_v41, 6  ;;  %v2024_v41 = vld [vmem:[%s2868_s3 + $0x30] sm:$0xff] }
  0xbb   : > { %1181 = vst.msk [vmem:[#allocation2 + $0x3c] sm:$0xf] %vm1173_vm13, %v2154_v27 }
  0xbc   : > { %v676_v24 = vpop.permute.xlu0 %675  ;;  %v1117_v19 = vrot.slane %v1115_v63, 4  ;;  %v1116_v25 = vsel %vm2523_vm12, %v1818_v13, %v1115_v63 }
  0xbd   : > { %713 = vst.msk [vmem:[#allocation2 + $0x58] sm:$0xf] %vm701_vm15, %v676_v24 }
  0xbe   : > { %1029 = vst.msk [vmem:[#allocation2 + $0x58] sm:$0xf] %vm1017_vm0, %v992_v56 }
  0xbf   : > { %v678_v38 = vpop.permute.xlu2 %677  ;;  %1165 = vst.msk [vmem:[#allocation2 + $0x44] sm:$0xf] %vm245_vm9, %v1116_v25  ;;  %v2792_v25 = vld [vmem:[%s2867_s2 + $0x8] sm:$0xff] }
  0xc0   : > { %v492_v29 = vpop.permute.xlu1 %491  ;;  %v1864_v31 = vld [vmem:[#allocation2 + $0x50] sm:$0xf]  ;;  %1182 = vst.msk [vmem:[#allocation2 + $0x44] sm:$0xf] %vm1173_vm13, %v2154_v27 }
  0xc1   : > { %535 = vst.msk [vmem:[#allocation2 + $0x28] sm:$0xf] %vm529_vm14, %v492_v29  ;;  %v1119_v29 = vsel %vm2523_vm12, %v1117_v19, %v1118_v20  ;;  %v2023_v20 = vld [vmem:[%s2868_s3 + $0x28] sm:$0xff] }
  0xc2   : > { %v1850_v1 = vld [vmem:[#allocation2 + $0x38] sm:$0xf0]  ;;  %1166 = vst.msk [vmem:[#allocation2 + $0x4c] sm:$0xf] %vm245_vm9, %v1119_v29 }
  0xc3   : > { %v1853_v5 = vor.u32 %v1992_v61, %v1850_v1  ;;  %1183 = vst.msk [vmem:[#allocation2 + $0x4c] sm:$0xf] %vm1173_vm13, %v2154_v27 }
  0xc4   : > { %v490_v33 = vpop.permute.xlu0 %489 }
  0xc5   : > { %534 = vst.msk [vmem:[#allocation2 + $0x20] sm:$0xf] %vm529_vm14, %v490_v33  ;;  %v1997_v37 = vld [vmem:[#allocation2 + $0x54] sm:$0xf0]  ;;  %1486 = vmatmul.bf16.gmra.mxu1 %v1853_v5 }
  0xc6   : > { %706 = vst.msk [vmem:[#allocation2 + $0x20] sm:$0xf] %vm701_vm15, %v662_v4  ;;  %v1865_v39 = vor.u32 %v1997_v37, %v1864_v31  ;;  %v1139_v4 = vrot.slane %v1057_v0, 6  ;;  %v2000_v31 = vld [vmem:[#allocation2 + $0x74] sm:$0xf] }
  0xc7   : > { %v996_v50 = vpop.permute.xlu2 %995 }
  0xc8   : > { %v978_v36 = vpop.permute.xlu1 %977  ;;  %1447 = vmatmul.bf16.vlgmr.msra.gmra.mxu3 %v1865_v39  ;;  %v1140_v9 = vsel %vm2523_vm12, %v1138_v3, %v1139_v4 }
  0xc9   : > { %1022 = vst.msk [vmem:[#allocation2 + $0x20] sm:$0xf] %vm1017_vm0, %v978_v36 }
  0xca   : > { %1172 = vst.msk [vmem:[#allocation2 + $0x7c] sm:$0xf] %vm245_vm9, %v1140_v9  ;;  %v1858_v36 = vld [vmem:[#allocation2 + $0x48] sm:$0xf0]  ;;  %v2025_v9 = vld [vmem:[%s2868_s3 + $0x38] sm:$0xff] }
  0xcb   : > { %1189 = vst.msk [vmem:[#allocation2 + $0x7c] sm:$0xf] %vm1173_vm13, %v2154_v27  ;;  %1710 = vmatpush.bf16.msrb.mxu2 %v2025_v9 }
  0xcc   : > { %v664_v47 = vpop.permute.xlu0 %663 }
  0xcd   : > { %707 = vst.msk [vmem:[#allocation2 + $0x28] sm:$0xf] %vm701_vm15, %v664_v47 }
  0xce   : > { %1023 = vst.msk [vmem:[#allocation2 + $0x28] sm:$0xf] %vm1017_vm0, %v980_v23  ;;  %v238_v23 = vld [vmem:[%s2237_s10 + $0x34] sm:$0xf]  ;;  %s2103_s10 = scalar_lea.hbm %s2102_s26, 8 }
  0xcf   : > { %v666_v58 = vpop.permute.xlu2 %665  ;;  %255 = vst.msk [vmem:[#allocation2 + $0x48] sm:$0xf] %vm245_vm9, %v238_v23  ;;  %1711 = vmatpush.bf16.msrb.mxu2 %v2024_v41  ;;  %p2104_p11 = scmp.ne.s32.totalorder %s2102_s26, %s2103_s10  ;;  %p2109_p1 = scmp.lt.s32.totalorder %s2107_s12, %s2103_s10 }
  0xd0   : > { %v508_v17 = vpop.permute.xlu1 %507  ;;  %v1840_v34 = vld [vmem:[#allocation2 + $0x20] sm:$0xf] }
  0xd1   : > { %543 = vst.msk [vmem:[#allocation2 + $0x68] sm:$0xf] %vm529_vm14, %v508_v17  ;;  %p2105_p12 = pnand %p2104_p11, %p2220_p5  ;;  %p2110_p2 = por %p2109_p1, %p2108_p0 }
  0xd2   : > { %v1882_v32 = vld [vmem:[#allocation2 + $0x78] sm:$0xf0] }
  0xd3   : > { %v1885_v33 = vor.u32 %v2000_v31, %v1882_v32  ;;  %1712 = vmatpush.bf16.msrb.mxu2 %v2023_v20  ;;  %p2106_p13 = pneg %p2105_p12 }
  0xd4   : > { %v506_v53 = vpop.permute.xlu0 %505 }
  0xd5   : > { %542 = vst.msk [vmem:[#allocation2 + $0x60] sm:$0xf] %vm529_vm14, %v506_v53  ;;  %v1991_v55 = vld [vmem:[#allocation2 + $0x24] sm:$0xf0]  ;;  %1506 = vmatmul.bf16.gmra.mxu2 %v1885_v33  ;;  %v2022_v33 = vld [vmem:[%s2868_s3 + $0x20] sm:$0xff]  ;;  %p2111_p3 = pnand %p2110_p2, %p2106_p13 }
  0xd6   : > { %714 = vst.msk [vmem:[#allocation2 + $0x60] sm:$0xf] %vm701_vm15, %v678_v38  ;;  %v1841_v56 = vor.u32 %v1991_v55, %v1840_v34  ;;  %v1994_v38 = vld [vmem:[#allocation2 + $0x44] sm:$0xf] }
  0xd7   : > { %v984_v14 = vpop.permute.xlu2 %983  ;;  %v1861_v8 = vor.u32 %v1994_v38, %v1858_v36  ;;  %1713 = vmatpush.bf16.msrb.mxu2 %v2022_v33 }
  0xd8   : > { %v994_v57 = vpop.permute.xlu1 %993  ;;  %1432 = vmatmul.bf16.gmra.mxu0 %v1841_v56 }
  0xd9   : > { %1030 = vst.msk [vmem:[#allocation2 + $0x60] sm:$0xf] %vm1017_vm0, %v994_v57  ;;  %1491 = vmatmul.bf16.gmra.mxu1 %v1861_v8 }
  0xdc   : > { %v680_v6 = vpop.permute.xlu0 %679 }
  0xdd   : > { %715 = vst.msk [vmem:[#allocation2 + $0x68] sm:$0xf] %vm701_vm15, %v680_v6 }
  0xde   : > { %1031 = vst.msk [vmem:[#allocation2 + $0x68] sm:$0xf] %vm1017_vm0, %v996_v50 }
  0xdf   : > { %v682_v60 = vpop.permute.xlu2 %681 }
  0xe0   : > { %v496_v10 = vpop.permute.xlu1 %495  ;;  %v1872_v52 = vld [vmem:[#allocation2 + $0x60] sm:$0xf] }
  0xe1   : > { %537 = vst.msk [vmem:[#allocation2 + $0x38] sm:$0xf] %vm529_vm14, %v496_v10 }
  0xe4   : > { %v494_v22 = vpop.permute.xlu0 %493 }
  0xe5   : > { %536 = vst.msk [vmem:[#allocation2 + $0x30] sm:$0xf] %vm529_vm14, %v494_v22  ;;  %v1999_v11 = vld [vmem:[#allocation2 + $0x64] sm:$0xf0] }
  0xe6   : > { %708 = vst.msk [vmem:[#allocation2 + $0x30] sm:$0xf] %vm701_vm15, %v666_v58  ;;  %v1873_v24 = vor.u32 %v1999_v11, %v1872_v52 }
  0xe7   : > { %v1000_v43 = vpop.permute.xlu2 %999 }
  0xe8   : > { %v982_v28 = vpop.permute.xlu1 %981  ;;  %1452 = vmatmul.bf16.gmra.mxu3 %v1873_v24 }
  0xe9   : > { %1024 = vst.msk [vmem:[#allocation2 + $0x30] sm:$0xf] %vm1017_vm0, %v982_v28 }
  0xec   : > { %v668_v35 = vpop.permute.xlu0 %667 }
  0xed   : > { %709 = vst.msk [vmem:[#allocation2 + $0x38] sm:$0xf] %vm701_vm15, %v668_v35  ;;  %v2801_v35 = vld [vmem:[%s2867_s2] sm:$0xff] }
  0xee   : > { %1025 = vst.msk [vmem:[#allocation2 + $0x38] sm:$0xf] %vm1017_vm0, %v984_v14 }
  0xef   : > { %v670_v45 = vpop.permute.xlu2 %669 }
  0xf0   : > { %v512_v37 = vpop.permute.xlu1 %511  ;;  %v1848_v39 = vld [vmem:[#allocation2 + $0x30] sm:$0xf] }
  0xf1   : > { %545 = vst.msk [vmem:[#allocation2 + $0x78] sm:$0xf] %vm529_vm14, %v512_v37 }
  0xf4   : > { %v510_v40 = vpop.permute.xlu0 %509 }
  0xf5   : > { %544 = vst.msk [vmem:[#allocation2 + $0x70] sm:$0xf] %vm529_vm14, %v510_v40  ;;  %v1993_v42 = vld [vmem:[#allocation2 + $0x34] sm:$0xf0] }
  0xf6   : > { %716 = vst.msk [vmem:[#allocation2 + $0x70] sm:$0xf] %vm701_vm15, %v682_v60  ;;  %v1849_v27 = vor.u32 %v1993_v42, %v1848_v39 }
  0xf7   : > { %v988_v17 = vpop.permute.xlu2 %987 }
  0xf8   : > { %v998_v44 = vpop.permute.xlu1 %997  ;;  %1437 = vmatmul.bf16.gmra.mxu0 %v1849_v27 }
  0xf9   : > { %1032 = vst.msk [vmem:[#allocation2 + $0x70] sm:$0xf] %vm1017_vm0, %v998_v44 }
  0xfb   : > { %v1472_v54 = vpop.f32.mrf.mxu1 }
  0xfc   : > { %v684_v15 = vpop.permute.xlu0 %683 }
  0xfd   : > { %717 = vst.msk [vmem:[#allocation2 + $0x78] sm:$0xf] %vm701_vm15, %v684_v15 }
  0xfe   : > { %1033 = vst.msk [vmem:[#allocation2 + $0x78] sm:$0xf] %vm1017_vm0, %v1000_v43 }
 0x100   : > { %v500_v21 = vpop.permute.xlu1 %499  ;;  %v1880_v16 = vld [vmem:[#allocation2 + $0x70] sm:$0xf] }
 0x101   : > { %539 = vst.msk [vmem:[#allocation2 + $0x48] sm:$0xf] %vm529_vm14, %v500_v21  ;;  %v2021_v21 = vld [vmem:[%s2868_s3 + $0x18] sm:$0xff] }
 0x102   : > { %1714 = vmatpush.bf16.msrb.mxu2 %v2021_v21 }
 0x103   : > { %v1474_v59 = vpop.f32.mrf.mxu1 }
 0x104   : > { %v498_v46 = vpop.permute.xlu0 %497 }
 0x105   : > { %538 = vst.msk [vmem:[#allocation2 + $0x40] sm:$0xf] %vm529_vm14, %v498_v46  ;;  %v2001_v47 = vld [vmem:[#allocation2 + $0x74] sm:$0xf0] }
 0x106   : > { %710 = vst.msk [vmem:[#allocation2 + $0x40] sm:$0xf] %vm701_vm15, %v670_v45  ;;  %v1881_v48 = vor.u32 %v2001_v47, %v1880_v16 }
 0x108   : > { %v986_v49 = vpop.permute.xlu1 %985  ;;  %1457 = vmatmul.bf16.gmra.mxu3 %v1881_v48 }
 0x109   : > { %1026 = vst.msk [vmem:[#allocation2 + $0x40] sm:$0xf] %vm1017_vm0, %v986_v49 }
 0x10b   : > { %v1477_v58 = vpop.f32.mrf.mxu1 }
 0x10c   : > { %v672_v50 = vpop.permute.xlu0 %671 }
 0x10d   : > { %711 = vst.msk [vmem:[#allocation2 + $0x48] sm:$0xf] %vm701_vm15, %v672_v50 }
 0x10e   : > { %1027 = vst.msk [vmem:[#allocation2 + $0x48] sm:$0xf] %vm1017_vm0, %v988_v17 }
 0x110   : > { %v1856_v34 = vld [vmem:[#allocation2 + $0x40] sm:$0xf] }
 0x113   : > { %v1479_v62 = vpop.f32.mrf.mxu1 }
 0x115   : > { %v1995_v51 = vld [vmem:[#allocation2 + $0x44] sm:$0xf0] }
 0x116   : > { %v1857_v53 = vor.u32 %v1995_v51, %v1856_v34 }
 0x117   : > { %v1497_v0 = vpop.f32.mrf.mxu2 }
 0x118   : > { %1442 = vmatmul.bf16.gmra.mxu0 %v1857_v53 }
 0x11f   : > { %v1499_v4 = vpop.f32.mrf.mxu2 }
 0x126   : > { %v1423_v55 = vpop.f32.mrf.mxu0 }
 0x127   : > { %v1473_v56 = vadd.f32 %v1472_v54, %v1423_v55  ;;  %v2020_v55 = vld [vmem:[%s2868_s3 + $0x10] sm:$0xff] }
 0x128   : > { %1715 = vmatpush.bf16.msrb.mxu2 %v2020_v55 }
 0x129   : > { %v1482_v2 = vpop.f32.mrf.mxu1  ;;  %v1514_v42 = vadd.f32 %v2801_v35, %v1473_v56 }
 0x12b   : > { %v1530_v34 = vmax.f32 %v1514_v42, 0.0 }
 0x12e   : > { %v1425_v57 = vpop.f32.mrf.mxu0 }
 0x12f   : > { %v1475_v23 = vadd.f32 %v1474_v59, %v1425_v57 }
 0x131   : > { %v1484_v6 = vpop.f32.mrf.mxu1  ;;  %v1515_v37 = vadd.f32 %v2792_v25, %v1475_v23 }
 0x133   : > { %v1531_v46 = vmax.f32 %v1515_v37, 0.0 }
 0x135   : > { %v1502_v10 = vpop.f32.mrf.mxu2 }
 0x136   : > { %v1428_v30 = vpop.f32.mrf.mxu0 }
 0x137   : > { %v1478_v11 = vadd.f32 %v1477_v58, %v1428_v30  ;;  %v1546_v30 = vmax.f32 %v1530_v34, %v1531_v46 }
 0x139   : > { %v1516_v38 = vadd.f32 %v2801_v35, %v1478_v11  ;;  %v1547_v41 = vrot.slane %v1546_v30, 4 }
 0x13b   : > { %v1532_v47 = vmax.f32 %v1516_v38, 0.0  ;;  %v1548_v23 = vmax.f32 %v1546_v30, %v1547_v41 }
 0x13d   : > { %v1504_v52 = vpop.f32.mrf.mxu2  ;;  %v1549_v37 = vrot.slane %v1548_v23, 2 }
 0x13e   : > { %v1430_v61 = vpop.f32.mrf.mxu0 }
 0x13f   : > { %v1480_v18 = vadd.f32 %v1479_v62, %v1430_v61 }
 0x141   : > { %v1517_v29 = vadd.f32 %v2792_v25, %v1480_v18 }
 0x142   : > { %v1487_v12 = vpop.f32.mrf.mxu1 }
 0x143   : > { %v1533_v27 = vmax.f32 %v1517_v29, 0.0 }
 0x145   : > { %v1553_v51 = vmax.f32 %v1532_v47, %v1533_v27 }
 0x14a   : > { %v1489_v14 = vpop.f32.mrf.mxu1 }
 0x14b   : > { %v1448_v3 = vpop.f32.mrf.mxu3 }
 0x14c   : > { %v1498_v43 = vadd.f32 %v1497_v0, %v1448_v3 }
 0x14e   : > { %v1524_v53 = vadd.f32 %v2801_v35, %v1498_v43 }
 0x153   : > { %v1450_v7 = vpop.f32.mrf.mxu3 }
 0x154   : > { %v1500_v39 = vadd.f32 %v1499_v4, %v1450_v7 }
 0x155   : > { %v1433_v1 = vpop.f32.mrf.mxu0 }
 0x156   : > { %v1483_v28 = vadd.f32 %v1482_v2, %v1433_v1  ;;  %v1525_v48 = vadd.f32 %v2792_v25, %v1500_v39  ;;  %v1554_v1 = vrot.slane %v1553_v51, 4  ;;  %v1540_v2 = vmax.f32 %v1524_v53, 0.0  ;;  %v1492_v3 = vpop.f32.mrf.mxu1 }
 0x158   : > { %v1507_v32 = vpop.f32.mrf.mxu2  ;;  %v1518_v40 = vadd.f32 %v2801_v35, %v1483_v28  ;;  %v1541_v58 = vmax.f32 %v1525_v48, 0.0  ;;  %v1555_v18 = vmax.f32 %v1553_v51, %v1554_v1 }
 0x15a   : > { %v1534_v17 = vmax.f32 %v1518_v40, 0.0 }
 0x15d   : > { %v1435_v5 = vpop.f32.mrf.mxu0 }
 0x15e   : > { %v1485_v22 = vadd.f32 %v1484_v6, %v1435_v5  ;;  %v2019_v5 = vld [vmem:[%s2868_s3 + $0x8] sm:$0xff] }
 0x15f   : > { %1716 = vmatpush.bf16.msrb.mxu2 %v2019_v5 }
 0x160   : > { %v1519_v60 = vadd.f32 %v2792_v25, %v1485_v22  ;;  %v1509_v62 = vpop.f32.mrf.mxu2 }
 0x162   : > { %v1535_v45 = vmax.f32 %v1519_v60, 0.0 }
 0x164   : > { %v1560_v56 = vmax.f32 %v1534_v17, %v1535_v45  ;;  %v1550_v45 = vmax.f32 %v1548_v23, %v1549_v37 }
 0x166   : > { %v1561_v6 = vrot.slane %v1560_v56, 4  ;;  %v1551_v53 = vrot.slane %v1550_v45, 1 }
 0x16b   : > { %v1453_v26 = vpop.f32.mrf.mxu3 }
 0x16c   : > { %v1503_v16 = vadd.f32 %v1502_v10, %v1453_v26 }
 0x16e   : > { %v1526_v57 = vadd.f32 %v2801_v35, %v1503_v16 }
 0x170   : > { %v1542_v7 = vmax.f32 %v1526_v57, 0.0 }
 0x173   : > { %v1455_v19 = vpop.f32.mrf.mxu3 }
 0x174   : > { %v1505_v8 = vadd.f32 %v1504_v52, %v1455_v19  ;;  %v2018_v52 = vld [vmem:[%s2868_s3] sm:$0xff]  ;;  %v1562_v19 = vmax.f32 %v1560_v56, %v1561_v6 }
 0x175   : > { %v1438_v63 = vpop.f32.mrf.mxu0  ;;  %1717 = vmatpush.bf16.msrb.mxu2 %v2018_v52 }
 0x176   : > { %v1488_v31 = vadd.f32 %v1487_v12, %v1438_v63  ;;  %v1527_v50 = vadd.f32 %v2792_v25, %v1505_v8  ;;  %v1581_v63 = vmax.f32 %v1540_v2, %v1541_v58  ;;  %v1563_v33 = vrot.slane %v1562_v19, 2 }
 0x178   : > { %v1520_v44 = vadd.f32 %v2801_v35, %v1488_v31  ;;  %v1543_v0 = vmax.f32 %v1527_v50, 0.0  ;;  %v1582_v11 = vrot.slane %v1581_v63, 4 }
 0x17a   : > { %v1536_v54 = vmax.f32 %v1520_v44, 0.0  ;;  %v1583_v38 = vmax.f32 %v1581_v63, %v1582_v11 }
 0x17c   : > { %v1584_v16 = vrot.slane %v1583_v38, 2 }
 0x17d   : > { %v1440_v13 = vpop.f32.mrf.mxu0 }
 0x17e   : > { %v1490_v24 = vadd.f32 %v1489_v14, %v1440_v13  ;;  %v1588_v13 = vmax.f32 %v1542_v7, %v1543_v0 }
 0x180   : > { %v1521_v36 = vadd.f32 %v2792_v25, %v1490_v24  ;;  %v1589_v28 = vrot.slane %v1588_v13, 4 }
 0x182   : > { %v1537_v49 = vmax.f32 %v1521_v36, 0.0  ;;  %v1494_v36 = vpop.f32.mrf.mxu1  ;;  %v1590_v8 = vmax.f32 %v1588_v13, %v1589_v28 }
 0x184   : > { %v1567_v61 = vmax.f32 %v1536_v54, %v1537_v49  ;;  %v1591_v47 = vrot.slane %v1590_v8, 2  ;;  %v1585_v54 = vmax.f32 %v1583_v38, %v1584_v16 }
 0x186   : > { %v1568_v12 = vrot.slane %v1567_v61, 4 }
 0x188   : > { %v1569_v24 = vmax.f32 %v1567_v61, %v1568_v12  ;;  %v1586_v61 = vrot.slane %v1585_v54, 1 }
 0x18a   : > { %v1570_v39 = vrot.slane %v1569_v24, 2  ;;  %v1587_v7 = vmax.f32 %v1585_v54, %v1586_v61 }
 0x18b   : > { %v1458_v15 = vpop.f32.mrf.mxu3 }
 0x18c   : > { %v1508_v59 = vadd.f32 %v1507_v32, %v1458_v15  ;;  %v1556_v32 = vrot.slane %v1555_v18, 2  ;;  %v1564_v15 = vmax.f32 %v1562_v19, %v1563_v33  ;;  %v1571_v46 = vmax.f32 %v1569_v24, %v1570_v39 }
 0x18e   : > { %v1528_v9 = vadd.f32 %v2801_v35, %v1508_v59  ;;  %v1557_v43 = vmax.f32 %v1555_v18, %v1556_v32  ;;  %v1565_v34 = vrot.slane %v1564_v15, 1  ;;  %v1572_v55 = vrot.slane %v1571_v46, 1 }
 0x190   : > { %v1544_v20 = vmax.f32 %v1528_v9, 0.0  ;;  %v1558_v17 = vrot.slane %v1557_v43, 1  ;;  %v1566_v30 = vmax.f32 %v1564_v15, %v1565_v34 }
 0x192   : > { %v1559_v57 = vmax.f32 %v1557_v43, %v1558_v17 }
 0x193   : > { %v1460_v4 = vpop.f32.mrf.mxu3 }
 0x194   : > { %v1510_v10 = vadd.f32 %v1509_v62, %v1460_v4  ;;  %v1573_v62 = vmax.f32 %v1571_v46, %v1572_v55  ;;  %v1603_v2 = vpack.c.bf16 %v1559_v57, %v1559_v57  ;;  %v1604_v4 = vpack.c.bf16 %v1566_v30, %v1566_v30 }
 0x195   : > { %v1443_v26 = vpop.f32.mrf.mxu0 }
 0x196   : > { %v1529_v14 = vadd.f32 %v2792_v25, %v1510_v10  ;;  %v1493_v31 = vadd.f32 %v1492_v3, %v1443_v26  ;;  %v1605_v9 = vpack.c.bf16 %v1573_v62, %v1573_v62  ;;  %v1639_v63 = vunpack.c.l.b16 %v1603_v2 }
 0x197   : > { %v1640_v26 = vunpack.c.l.b16 %v1604_v4 }
 0x198   : > { %v1545_v22 = vmax.f32 %v1529_v14, 0.0  ;;  %v1522_v42 = vadd.f32 %v2801_v35, %v1493_v31  ;;  %v1592_v35 = vmax.f32 %v1590_v8, %v1591_v47  ;;  %v1607_v14 = vpack.c.bf16 %v1587_v7, %v1587_v7 }
 0x199   : > { %v1641_v18 = vunpack.c.l.b16 %v1605_v9 }
 0x19a   : > { %v1595_v29 = vmax.f32 %v1544_v20, %v1545_v22  ;;  %v1538_v48 = vmax.f32 %v1522_v42, 0.0  ;;  %v1593_v0 = vrot.slane %v1592_v35, 1  ;;  %v1643_v28 = vunpack.c.l.b16 %v1607_v14 }
 0x19c   : > { %v1596_v60 = vrot.slane %v1595_v29, 4  ;;  %v1594_v10 = vmax.f32 %v1592_v35, %v1593_v0 }
 0x19d   : > { %v1445_v40 = vpop.f32.mrf.mxu0 }
 0x19e   : > { %v1495_v27 = vadd.f32 %v1494_v36, %v1445_v40  ;;  %v1597_v44 = vmax.f32 %v1595_v29, %v1596_v60  ;;  %v1608_v20 = vpack.c.bf16 %v1594_v10, %v1594_v10  ;;  %v2086_v36 = vld [vmem:[%s2869_s4] ss:$0 sm:$0xff] }
 0x1a0   : > { %v1523_v21 = vadd.f32 %v2792_v25, %v1495_v27  ;;  %v1598_v50 = vrot.slane %v1597_v44, 2  ;;  %v1552_v25 = vmax.f32 %v1550_v45, %v1551_v53  ;;  %v1644_v31 = vunpack.c.l.b16 %v1608_v20 }
 0x1a2   : > { %v1539_v49 = vmax.f32 %v1523_v21, 0.0  ;;  %v1599_v59 = vmax.f32 %v1597_v44, %v1598_v50  ;;  %v1602_v6 = vpack.c.bf16 %v1552_v25, %v1552_v25 }
 0x1a4   : > { %v1574_v51 = vmax.f32 %v1538_v48, %v1539_v49  ;;  %v1600_v3 = vrot.slane %v1599_v59, 1  ;;  %v1638_v13 = vunpack.c.l.b16 %v1602_v6 }
 0x1a6   : > { %v1575_v56 = vrot.slane %v1574_v51, 4  ;;  %v1601_v12 = vmax.f32 %v1599_v59, %v1600_v3  ;;  %v1647_v22 = vsel %vm1646_vm1, %v1639_v63, %v1638_v13 }
 0x1a7   : > { %v1649_v24 = vsel %vm1648_vm2, %v1640_v26, %v1647_v22 }
 0x1a8   : > { %v1576_v58 = vmax.f32 %v1574_v51, %v1575_v56  ;;  %v1609_v23 = vpack.c.bf16 %v1601_v12, %v1601_v12  ;;  %v1651_v29 = vsel %vm1650_vm3, %v1641_v18, %v1649_v24 }
 0x1aa   : > { %v1577_v1 = vrot.slane %v1576_v58, 2  ;;  %v1645_v33 = vunpack.c.l.b16 %v1609_v23 }
 0x1ac   : > { %v1578_v5 = vmax.f32 %v1576_v58, %v1577_v1 }
 0x1ae   : > { %v1579_v41 = vrot.slane %v1578_v5, 1 }
 0x1b0   : > { %v1580_v52 = vmax.f32 %v1578_v5, %v1579_v41 }
 0x1b2   : > { %v1606_v19 = vpack.c.bf16 %v1580_v52, %v1580_v52 }
 0x1b4   : > { %v1642_v11 = vunpack.c.l.b16 %v1606_v19 }
 0x1b6   : > { %v1653_v32 = vsel %vm1652_vm4, %v1642_v11, %v1651_v29 }
 0x1b7   : > { %v1655_v60 = vsel %vm1654_vm5, %v1643_v28, %v1653_v32 }
 0x1b8   : > { %v1657_v37 = vsel %vm1656_vm6, %v1644_v31, %v1655_v60 }
 0x1b9   : > { %v1659_v38 = vsel %vm1658_vm7, %v1645_v33, %v1657_v37 }
 0x1ba   : > { %v1660_v39 = vpack.c.b16 %v1659_v38, %v1659_v38 }
 0x1bc   : > { %1718 = vmatmul.bf16.vlgmr.msrb.gmra.mxu2 %v1660_v39 }
 0x23f   : > { %v1719_v40 = vpop.f32.mrf.mxu2 }
 0x240   : > { %v1720_v8 = vadd.f32 %v2086_v36, %v1719_v40 }
 0x242   : > { %1723 = vst [vmem:[%s220_s17] sm:$0xff] %v1720_v8 }
 0x243   : > { %2114 = shalt.err (!%p2111_p3)
}
 0x244   : > { %2043 = dma.vmem_to_hbm [thread:$0]  (%p2220_p5), %s1738_s22, 128, %s1740_s23, %s1725_s25  }
 0x247   : > { %v1721_v42 = vpop.f32.mrf.mxu2 }
 0x248 PF: > { %p2049_p4 = scmp.ge.s32.totalorder %s2149_s21, 2  ;;  %s1751_s6 = sand.u32 1, %s2137_s18  }
 0x249   : > { %s1752_s8 = scalar_lea.sflag [#allocation4], %s1751_s6 }
 0x24a   : > { %p2046_p7 = pnand %p2049_p4, %p2224_p6 }
 0x24c   : > { %p2047_p8 = pneg %p2046_p7 }
 0x24e   : > { %2132 = dma.done.wait (%p2047_p8), %s1752_s8, 128  }
 0x24f   : > { %2134 = vsyncadd (%p2047_p8), %s1752_s8, 4294967168  ;;  %p15_p9 = scmp.ge.s32.totalorder %s2208_s24, 4   ;;  %s2881_s18 = smov %s2141_s19 }
 0x250   : > { %s2882_s19 = smov %s2145_s20  ;;  %s2883_s20 = smov %s2218_s27 }
 0x251   : > { %s2884_s21 = smov %s2208_s24  ;;  %17 = sbr.rel (!%p15_p9) target bundleno = 3 (0x3), region = 75 }
 0x256   :  { %1758 = vsyncpa [#allocation4], 1 }
 0x257   :  { %1760 = vsyncpa [#allocation4 + $0x1], 1 }

</bundles_post_ra>
